<compile_context>
chip_gen: v7x
topology: tpu7x:2x2x1
jax: 0.10.0
libtpu: 0.0.40
codegen_flags: <defaults>
</compile_context>

<pallas_src>
import functools

import jax
import jax.numpy as jnp
import numpy as np
from jax import lax
from jax.experimental import pallas as pl
from jax.experimental.pallas import tpu as pltpu

MXU_DTYPE = jnp.bfloat16


def _round_up(x, m):
    return ((x + m - 1) // m) * m


def _route_lstm_kernel(emb_ref, wx_ref, w_ih_e_ref, w_ih_w_ref, w_hh_ref,
                       b_ref, w_fc_ref, b_fc_ref, out_ref, gates_scr,
                       *, n_streams, unroll, mxu_dtype):
    """One batch-block: full-sequence LSTM + final linear head.

    emb_ref   : (T, TB, E)   f32   time-major embeddings
    wx_ref    : (T, TB, W)   f32   time-major weather features
    w_ih_e_ref: (E, 4H)      bf16  input->gates weights, embedding rows
                                   (g columns pre-scaled x2)
    w_ih_w_ref: (W, 4H)      bf16  input->gates weights, weather rows
    w_hh_ref  : (H, 4H)      bf16  hidden->gates weights (g cols pre-scaled x2)
    b_ref     : (1, 4H)      f32   b_ih + b_hh (g block pre-scaled x2)
    w_fc_ref  : (H, Npad)    bf16  fc weight transposed, zero-padded columns
    b_fc_ref  : (1, Npad)    f32
    out_ref   : (TB, Npad)   f32   logits (padded)
    gates_scr : (T, TB, 4H)  f32   hoisted input-projection pre-activations
    """
    T, TB, E = emb_ref.shape
    W = wx_ref.shape[2]
    H = w_hh_ref.shape[0]
    sub = TB // n_streams

    # --- Hoisted input projection: two big, well-shaped bf16 matmuls. -------
    emb_all = emb_ref[...].reshape(T * TB, E).astype(mxu_dtype)
    wx_all = wx_ref[...].reshape(T * TB, W).astype(mxu_dtype)
    gates_x = (jnp.dot(emb_all, w_ih_e_ref[...],
                       preferred_element_type=jnp.float32)
               + jnp.dot(wx_all, w_ih_w_ref[...],
                         preferred_element_type=jnp.float32)
               + b_ref[...])                                     # (T*TB, 4H) f32
    gates_scr[...] = gates_x.reshape(T, TB, 4 * H)

    w_hh = w_hh_ref[...]                                         # hoisted, bf16

    h0 = tuple(jnp.zeros((sub, H), jnp.float32) for _ in range(n_streams))
    c0 = tuple(jnp.zeros((sub, H), jnp.float32) for _ in range(n_streams))

    def step(t, carry):
        hs, cs = carry
        g_t = gates_scr[t]                                       # (TB, 4H) f32
        new_h, new_c = [], []
        # Independent sub-streams: their dot -> sigmoid -> VPU chains have no
        # data dependence, so the scheduler overlaps MXU / EUP across them.
        for si in range(n_streams):
            lo = si * sub
            gates = g_t[lo:lo + sub] + jnp.dot(
                hs[si].astype(mxu_dtype), w_hh,
                preferred_element_type=jnp.float32)              # (sub, 4H) f32
            # One full-width EUP sigmoid; g-gate columns were pre-scaled by 2
            # so tanh(x) = 2*sigmoid(2x) - 1 falls out with a VPU fixup.
            s = jax.nn.sigmoid(gates)
            i = s[:, 0 * H:1 * H]
            f = s[:, 1 * H:2 * H]
            g = 2.0 * s[:, 2 * H:3 * H] - 1.0                    # == tanh
            o = s[:, 3 * H:4 * H]
            c_new = f * cs[si] + i * g
            h_new = o * jnp.tanh(c_new)
            new_h.append(h_new)
            new_c.append(c_new)
        return (tuple(new_h), tuple(new_c))

    hs_last, _ = lax.fori_loop(0, T, step, (h0, c0), unroll=unroll)
    h_last = hs_last[0] if n_streams == 1 else jnp.concatenate(hs_last, axis=0)

    out_ref[...] = (jnp.dot(h_last.astype(mxu_dtype), w_fc_ref[...],
                            preferred_element_type=jnp.float32)
                    + b_fc_ref[...])


def prepare_params(params, mxu_dtype=MXU_DTYPE):
    """One-time parameter preprocessing (hoisted out of the forward call)."""
    w_ih = params["w_ih"]                # (4H, D_in)  PyTorch layout
    w_hh = params["w_hh"]                # (4H, H)
    b_ih = params["b_ih"]                # (4H,)
    b_hh = params["b_hh"]                # (4H,)
    w_fc = params["w_fc"]                # (n_cells, H)
    b_fc = params["b_fc"]                # (n_cells,)
    emb_table = params["embed"]          # (n_cells, E)

    n_cells, E = emb_table.shape
    H = w_hh.shape[1]
    W = w_ih.shape[1] - E

    # g-gate columns pre-scaled by 2 for the tanh-from-sigmoid trick.
    g_scale = jnp.concatenate([
        jnp.ones((2 * H,), jnp.float32),
        jnp.full((H,), 2.0, jnp.float32),
        jnp.ones((H,), jnp.float32),
    ])                                                           # (4H,)
    w_ih_t = jnp.transpose(w_ih).astype(jnp.float32) * g_scale[None, :]
    w_hh_t = jnp.transpose(w_hh).astype(jnp.float32) * g_scale[None, :]
    b = ((b_ih + b_hh).astype(jnp.float32) * g_scale).reshape(1, 4 * H)

    # FC padded to lane-dense (multiple of 128) columns.
    N_pad = _round_up(n_cells, 128)
    w_fc_t = jnp.zeros((H, N_pad), jnp.float32).at[:, :n_cells].set(
        jnp.transpose(w_fc).astype(jnp.float32))
    b_fc_p = jnp.zeros((1, N_pad), jnp.float32).at[:, :n_cells].set(
        b_fc.astype(jnp.float32))

    return {
        "embed": emb_table.astype(jnp.float32),
        "w_ih_e": w_ih_t[:E].astype(mxu_dtype),      # (E, 4H) bf16
        "w_ih_w": w_ih_t[E:].astype(mxu_dtype),      # (W, 4H) bf16
        "w_hh": w_hh_t.astype(mxu_dtype),            # (H, 4H) bf16
        "b": b,                                      # (1, 4H) f32
        "w_fc": w_fc_t.astype(mxu_dtype),            # (H, N_pad) bf16
        "b_fc": b_fc_p,                               # (1, N_pad) f32
        "n_cells": n_cells, "E": E, "W": W, "H": H, "N_pad": N_pad,
    }


def _vmem_limit_bytes(T, TB, E, W, H, N_pad):
    f32, bf16 = 4, 2
    inputs = 2 * T * TB * (E + W) * f32                  # double-buffered seq
    weights = 2 * ((E + W + H) * 4 * H + H * N_pad) * bf16
    biases = 2 * (4 * H + N_pad) * f32
    out = 2 * TB * N_pad * f32
    scratch = T * TB * 4 * H * f32
    est = inputs + weights + biases + out + scratch
    return int(min(max(2 * est, 16 << 20), 64 << 20))    # cap at v7x physical


def route_lstm_forward(X_cells, X_wx, prep):
    """Plain-JAX glue (embedding gather, padding) around the Pallas kernel."""
    E, W, H, n_cells, N_pad = (prep["E"], prep["W"], prep["H"],
                               prep["n_cells"], prep["N_pad"])
    B, T = X_cells.shape

    # ---- Batch block selection ---------------------------------------------
    # Multiple of 16 => two 8-row sublane-aligned sub-streams per block.
    TB = min(_round_up(B, 16), 128)
    B_pad = _round_up(B, TB)
    # Prefer >= 2 grid blocks (v7x megacore) when halving TB keeps alignment.
    if B_pad // TB < 2 and TB >= 32:
        TB = _round_up(TB // 2, 16)
        B_pad = _round_up(B, TB)
    n_streams = 2 if (TB % 16 == 0 and TB >= 16) else 1
    unroll = T if T <= 16 else 8

    # ---- Time-major inputs without a full (B,T,D) HBM transpose. -----------
    emb_tm = prep["embed"][jnp.transpose(X_cells)]               # (T, B, E)
    wx_tm = jnp.transpose(X_wx, (1, 0, 2)).astype(jnp.float32)   # (T, B, W)
    if B_pad != B:
        emb_tm = jnp.pad(emb_tm, ((0, 0), (0, B_pad - B), (0, 0)))
        wx_tm = jnp.pad(wx_tm, ((0, 0), (0, B_pad - B), (0, 0)))

    kernel = functools.partial(_route_lstm_kernel,
                               n_streams=n_streams, unroll=unroll,
                               mxu_dtype=MXU_DTYPE)

    grid = (B_pad // TB,)
    logits_pad = pl.pallas_call(
        kernel,
        out_shape=jax.ShapeDtypeStruct((B_pad, N_pad), jnp.float32),
        grid_spec=pltpu.PrefetchScalarGridSpec(
            num_scalar_prefetch=0,
            grid=grid,
            in_specs=[
                pl.BlockSpec((T, TB, E), lambda i: (0, i, 0)),    # embeddings
                pl.BlockSpec((T, TB, W), lambda i: (0, i, 0)),    # weather
                pl.BlockSpec((E, 4 * H), lambda i: (0, 0)),       # W_ih^T (emb)
                pl.BlockSpec((W, 4 * H), lambda i: (0, 0)),       # W_ih^T (wx)
                pl.BlockSpec((H, 4 * H), lambda i: (0, 0)),       # W_hh^T
                pl.BlockSpec((1, 4 * H), lambda i: (0, 0)),       # bias
                pl.BlockSpec((H, N_pad), lambda i: (0, 0)),       # W_fc^T
                pl.BlockSpec((1, N_pad), lambda i: (0, 0)),       # b_fc
            ],
            out_specs=pl.BlockSpec((TB, N_pad), lambda i: (i, 0)),
            scratch_shapes=[
                pltpu.VMEM((T, TB, 4 * H), jnp.float32),  # hoisted gate pre-acts
            ],
        ),
        compiler_params=pltpu.CompilerParams(
            dimension_semantics=("parallel",),
            vmem_limit_bytes=_vmem_limit_bytes(T, TB, E, W, H, N_pad),
        ),
    )(emb_tm, wx_tm, prep["w_ih_e"], prep["w_ih_w"], prep["w_hh"],
      prep["b"], prep["w_fc"], prep["b_fc"])

    return logits_pad[:B, :n_cells]


def route_lstm_reference(X_cells, X_wx, params):
    """Pure-JAX f32 reference matching PyTorch LSTM semantics (1 layer)."""
    emb = params["embed"][X_cells]
    inp = jnp.concatenate([emb, X_wx], axis=2).astype(jnp.float32)  # (B, T, D)
    H = params["w_hh"].shape[1]
    B = inp.shape[0]
    w_ih, w_hh = params["w_ih"], params["w_hh"]
    b = params["b_ih"] + params["b_hh"]

    def step(carry, x_t):
        h, c = carry
        gates = x_t @ w_ih.T + h @ w_hh.T + b
        i = jax.nn.sigmoid(gates[:, 0 * H:1 * H])
        f = jax.nn.sigmoid(gates[:, 1 * H:2 * H])
        g = jnp.tanh(gates[:, 2 * H:3 * H])
        o = jax.nn.sigmoid(gates[:, 3 * H:4 * H])
        c = f * c + i * g
        h = o * jnp.tanh(c)
        return (h, c), None

    h0 = jnp.zeros((B, H), jnp.float32)
    c0 = jnp.zeros((B, H), jnp.float32)
    (h_last, _), _ = lax.scan(step, (h0, c0), jnp.transpose(inp, (1, 0, 2)))
    return h_last @ params["w_fc"].T + params["b_fc"]


def init_params(key, n_cells, wx_dim, emb_dim, hidden):
    d_in = emb_dim + wx_dim
    k = jax.random.split(key, 7)
    s = 1.0 / np.sqrt(hidden)
    return {
        "embed": jax.random.normal(k[0], (n_cells, emb_dim), jnp.float32),
        "w_ih": jax.random.uniform(k[1], (4 * hidden, d_in), jnp.float32, -s, s),
        "w_hh": jax.random.uniform(k[2], (4 * hidden, hidden), jnp.float32, -s, s),
        "b_ih": jax.random.uniform(k[3], (4 * hidden,), jnp.float32, -s, s),
        "b_hh": jax.random.uniform(k[4], (4 * hidden,), jnp.float32, -s, s),
        "w_fc": jax.random.uniform(k[5], (n_cells, hidden), jnp.float32, -s, s),
        "b_fc": jax.random.uniform(k[6], (n_cells,), jnp.float32, -s, s),
    }


if __name__ == "__main__":
    # Small shapes consistent with the module's forward.
    B, T = 2, 8
    n_cells, wx_dim, emb_dim, hidden = 16, 8, 32, 32

    key = jax.random.PRNGKey(0)
    kp, kc, kw = jax.random.split(key, 3)
    params = init_params(kp, n_cells, wx_dim, emb_dim, hidden)

    X_cells = jax.random.randint(kc, (B, T), 0, n_cells, dtype=jnp.int32)
    X_wx = jax.random.normal(kw, (B, T, wx_dim), jnp.float32)

    prep = prepare_params(params)                     # one-time weight prep
    logits = route_lstm_forward(X_cells, X_wx, prep)
    logits = jax.block_until_ready(logits)

    ref = route_lstm_reference(X_cells, X_wx, params)
    # bf16 MXU operands (f32 accumulation): tolerance relaxed vs. f32 ref.
    np.testing.assert_allclose(np.asarray(logits), np.asarray(ref),
                               rtol=2e-2, atol=2e-2)
    print("KERNEL_OK")
</pallas_src>

<mosaic_0001>
module attributes {stable_mosaic.version = 11 : i64} {
  func.func @_route_lstm_kernel(%arg0: i32, %arg1: memref<8x16x32xf32, #tpu.memory_space<vmem>>, %arg2: memref<8x16x8xf32, #tpu.memory_space<vmem>>, %arg3: memref<32x128xbf16, #tpu.memory_space<vmem>>, %arg4: memref<8x128xbf16, #tpu.memory_space<vmem>>, %arg5: memref<32x128xbf16, #tpu.memory_space<vmem>>, %arg6: memref<1x128xf32, #tpu.memory_space<vmem>>, %arg7: memref<32x128xbf16, #tpu.memory_space<vmem>>, %arg8: memref<1x128xf32, #tpu.memory_space<vmem>>, %arg9: memref<16x128xf32, #tpu.memory_space<vmem>>, %arg10: memref<8x16x128xf32, #tpu.memory_space<vmem>>) attributes {dimension_semantics = [#tpu.dimension_semantics<parallel>], iteration_bounds = array<i64: 1>, scalar_prefetch = 0 : i64, scratch_operands = 1 : i64, tpu.core_type = #tpu.core_type<tc>, window_params = [{transform_indices = @transform_0, window_bounds = array<i64: 8, 16, 32>}, {transform_indices = @transform_1, window_bounds = array<i64: 8, 16, 8>}, {pipeline_mode = #tpu.pipeline_mode<synchronous>, transform_indices = @transform_2, window_bounds = array<i64: 32, 128>}, {pipeline_mode = #tpu.pipeline_mode<synchronous>, transform_indices = @transform_3, window_bounds = array<i64: 8, 128>}, {pipeline_mode = #tpu.pipeline_mode<synchronous>, transform_indices = @transform_4, window_bounds = array<i64: 32, 128>}, {pipeline_mode = #tpu.pipeline_mode<synchronous>, transform_indices = @transform_5, window_bounds = array<i64: 1, 128>}, {pipeline_mode = #tpu.pipeline_mode<synchronous>, transform_indices = @transform_6, window_bounds = array<i64: 32, 128>}, {pipeline_mode = #tpu.pipeline_mode<synchronous>, transform_indices = @transform_7, window_bounds = array<i64: 1, 128>}, {transform_indices = @transform_8, window_bounds = array<i64: 16, 128>}]} {
    %c0 = arith.constant 0 : index
    %c0_0 = arith.constant 0 : index
    %c0_1 = arith.constant 0 : index
    %0 = vector.load %arg1[%c0, %c0_0, %c0_1] : memref<8x16x32xf32, #tpu.memory_space<vmem>>, vector<8x16x32xf32>
    %1 = vector.shape_cast %0 : vector<8x16x32xf32> to vector<128x32xf32>
    %2 = arith.truncf %1 : vector<128x32xf32> to vector<128x32xbf16>
    %c0_2 = arith.constant 0 : index
    %c0_3 = arith.constant 0 : index
    %c0_4 = arith.constant 0 : index
    %3 = vector.load %arg2[%c0_2, %c0_3, %c0_4] : memref<8x16x8xf32, #tpu.memory_space<vmem>>, vector<8x16x8xf32>
    %4 = vector.shape_cast %3 : vector<8x16x8xf32> to vector<128x8xf32>
    %5 = arith.truncf %4 : vector<128x8xf32> to vector<128x8xbf16>
    %c0_5 = arith.constant 0 : index
    %c0_6 = arith.constant 0 : index
    %6 = vector.load %arg3[%c0_5, %c0_6] : memref<32x128xbf16, #tpu.memory_space<vmem>>, vector<32x128xbf16>
    %cst = arith.constant dense<0.000000e+00> : vector<128x128xf32>
    %7 = tpu.matmul %2, %6, %cst {dimension_numbers = #tpu.dot_dimension_numbers<[1], [0], [0], [1], [0, 0, 1, 1], [], []>} : vector<128x32xbf16>, vector<32x128xbf16>, vector<128x128xf32> -> vector<128x128xf32>
    %c0_7 = arith.constant 0 : index
    %c0_8 = arith.constant 0 : index
    %8 = vector.load %arg4[%c0_7, %c0_8] : memref<8x128xbf16, #tpu.memory_space<vmem>>, vector<8x128xbf16>
    %cst_9 = arith.constant dense<0.000000e+00> : vector<128x128xf32>
    %9 = tpu.matmul %5, %8, %cst_9 {dimension_numbers = #tpu.dot_dimension_numbers<[1], [0], [0], [1], [0, 0, 1, 1], [], []>} : vector<128x8xbf16>, vector<8x128xbf16>, vector<128x128xf32> -> vector<128x128xf32>
    %10 = arith.addf %7, %9 : vector<128x128xf32>
    %c0_10 = arith.constant 0 : index
    %c0_11 = arith.constant 0 : index
    %11 = vector.load %arg6[%c0_10, %c0_11] : memref<1x128xf32, #tpu.memory_space<vmem>>, vector<1x128xf32>
    %12 = vector.broadcast %11 : vector<1x128xf32> to vector<128x128xf32>
    %13 = arith.addf %10, %12 : vector<128x128xf32>
    %14 = vector.shape_cast %13 : vector<128x128xf32> to vector<8x16x128xf32>
    %c0_12 = arith.constant 0 : index
    %c0_13 = arith.constant 0 : index
    %c0_14 = arith.constant 0 : index
    %15 = vector.load %arg10[%c0_12, %c0_13, %c0_14] : memref<8x16x128xf32, #tpu.memory_space<vmem>>, vector<8x16x128xf32>
    tpu.vector_store %arg10[%c0_12, %c0_13, %c0_14], %14 {strides = array<i32>} : memref<8x16x128xf32, #tpu.memory_space<vmem>>, vector<8x16x128xf32>,
    %c0_15 = arith.constant 0 : index
    %c0_16 = arith.constant 0 : index
    %16 = vector.load %arg5[%c0_15, %c0_16] : memref<32x128xbf16, #tpu.memory_space<vmem>>, vector<32x128xbf16>
    %cst_17 = arith.constant 0.000000e+00 : f32
    %17 = vector.broadcast %cst_17 : f32 to vector<8x32xf32>
    %cst_18 = arith.constant 0.000000e+00 : f32
    %18 = vector.broadcast %cst_18 : f32 to vector<8x32xf32>
    %cst_19 = arith.constant 0.000000e+00 : f32
    %19 = vector.broadcast %cst_19 : f32 to vector<8x32xf32>
    %cst_20 = arith.constant 0.000000e+00 : f32
    %20 = vector.broadcast %cst_20 : f32 to vector<8x32xf32>
    %c0_i32 = arith.constant 0 : i32
    %21 = arith.index_cast %c0_i32 : i32 to index
    %c0_21 = arith.constant 0 : index
    %c0_22 = arith.constant 0 : index
    %22 = vector.load %arg10[%21, %c0_21, %c0_22] : memref<8x16x128xf32, #tpu.memory_space<vmem>>, vector<1x16x128xf32>
    %23 = vector.shape_cast %22 : vector<1x16x128xf32> to vector<16x128xf32>
    %24 = vector.extract_strided_slice %23 {offsets = [0, 0], sizes = [8, 128], strides = [1, 1]} : vector<16x128xf32> to vector<8x128xf32>
    %25 = arith.truncf %17 : vector<8x32xf32> to vector<8x32xbf16>
    %cst_23 = arith.constant dense<0.000000e+00> : vector<8x128xf32>
    %26 = tpu.matmul %25, %16, %cst_23 {dimension_numbers = #tpu.dot_dimension_numbers<[1], [0], [0], [1], [0, 0, 1, 1], [], []>} : vector<8x32xbf16>, vector<32x128xbf16>, vector<8x128xf32> -> vector<8x128xf32>
    %27 = arith.addf %24, %26 : vector<8x128xf32>
    %28 = arith.negf %27 : vector<8x128xf32>
    %29 = math.exp %28 : vector<8x128xf32>
    %cst_24 = arith.constant 1.000000e+00 : f32
    %30 = vector.broadcast %cst_24 : f32 to vector<8x128xf32>
    %31 = arith.addf %30, %29 : vector<8x128xf32>
    %32 = arith.divf %30, %31 : vector<8x128xf32>
    %33 = vector.extract_strided_slice %32 {offsets = [0, 0], sizes = [8, 32], strides = [1, 1]} : vector<8x128xf32> to vector<8x32xf32>
    %34 = vector.extract_strided_slice %32 {offsets = [0, 32], sizes = [8, 32], strides = [1, 1]} : vector<8x128xf32> to vector<8x32xf32>
    %35 = vector.extract_strided_slice %32 {offsets = [0, 64], sizes = [8, 32], strides = [1, 1]} : vector<8x128xf32> to vector<8x32xf32>
    %cst_25 = arith.constant 2.000000e+00 : f32
    %36 = vector.broadcast %cst_25 : f32 to vector<8x32xf32>
    %37 = arith.mulf %36, %35 : vector<8x32xf32>
    %cst_26 = arith.constant 1.000000e+00 : f32
    %38 = vector.broadcast %cst_26 : f32 to vector<8x32xf32>
    %39 = arith.subf %37, %38 : vector<8x32xf32>
    %40 = vector.extract_strided_slice %32 {offsets = [0, 96], sizes = [8, 32], strides = [1, 1]} : vector<8x128xf32> to vector<8x32xf32>
    %41 = arith.mulf %34, %19 : vector<8x32xf32>
    %42 = arith.mulf %33, %39 : vector<8x32xf32>
    %43 = arith.addf %41, %42 : vector<8x32xf32>
    %44 = math.tanh %43 : vector<8x32xf32>
    %45 = arith.mulf %40, %44 : vector<8x32xf32>
    %46 = vector.extract_strided_slice %23 {offsets = [8, 0], sizes = [8, 128], strides = [1, 1]} : vector<16x128xf32> to vector<8x128xf32>
    %47 = arith.truncf %18 : vector<8x32xf32> to vector<8x32xbf16>
    %cst_27 = arith.constant dense<0.000000e+00> : vector<8x128xf32>
    %48 = tpu.matmul %47, %16, %cst_27 {dimension_numbers = #tpu.dot_dimension_numbers<[1], [0], [0], [1], [0, 0, 1, 1], [], []>} : vector<8x32xbf16>, vector<32x128xbf16>, vector<8x128xf32> -> vector<8x128xf32>
    %49 = arith.addf %46, %48 : vector<8x128xf32>
    %50 = arith.negf %49 : vector<8x128xf32>
    %51 = math.exp %50 : vector<8x128xf32>
    %cst_28 = arith.constant 1.000000e+00 : f32
    %52 = vector.broadcast %cst_28 : f32 to vector<8x128xf32>
    %53 = arith.addf %52, %51 : vector<8x128xf32>
    %54 = arith.divf %52, %53 : vector<8x128xf32>
    %55 = vector.extract_strided_slice %54 {offsets = [0, 0], sizes = [8, 32], strides = [1, 1]} : vector<8x128xf32> to vector<8x32xf32>
    %56 = vector.extract_strided_slice %54 {offsets = [0, 32], sizes = [8, 32], strides = [1, 1]} : vector<8x128xf32> to vector<8x32xf32>
    %57 = vector.extract_strided_slice %54 {offsets = [0, 64], sizes = [8, 32], strides = [1, 1]} : vector<8x128xf32> to vector<8x32xf32>
    %cst_29 = arith.constant 2.000000e+00 : f32
    %58 = vector.broadcast %cst_29 : f32 to vector<8x32xf32>
    %59 = arith.mulf %58, %57 : vector<8x32xf32>
    %cst_30 = arith.constant 1.000000e+00 : f32
    %60 = vector.broadcast %cst_30 : f32 to vector<8x32xf32>
    %61 = arith.subf %59, %60 : vector<8x32xf32>
    %62 = vector.extract_strided_slice %54 {offsets = [0, 96], sizes = [8, 32], strides = [1, 1]} : vector<8x128xf32> to vector<8x32xf32>
    %63 = arith.mulf %56, %20 : vector<8x32xf32>
    %64 = arith.mulf %55, %61 : vector<8x32xf32>
    %65 = arith.addf %63, %64 : vector<8x32xf32>
    %66 = math.tanh %65 : vector<8x32xf32>
    %67 = arith.mulf %62, %66 : vector<8x32xf32>
    %c1_i32 = arith.constant 1 : i32
    %68 = arith.index_cast %c1_i32 : i32 to index
    %c0_31 = arith.constant 0 : index
    %c0_32 = arith.constant 0 : index
    %69 = vector.load %arg10[%68, %c0_31, %c0_32] : memref<8x16x128xf32, #tpu.memory_space<vmem>>, vector<1x16x128xf32>
    %70 = vector.shape_cast %69 : vector<1x16x128xf32> to vector<16x128xf32>
    %71 = vector.extract_strided_slice %70 {offsets = [0, 0], sizes = [8, 128], strides = [1, 1]} : vector<16x128xf32> to vector<8x128xf32>
    %72 = arith.truncf %45 : vector<8x32xf32> to vector<8x32xbf16>
    %cst_33 = arith.constant dense<0.000000e+00> : vector<8x128xf32>
    %73 = tpu.matmul %72, %16, %cst_33 {dimension_numbers = #tpu.dot_dimension_numbers<[1], [0], [0], [1], [0, 0, 1, 1], [], []>} : vector<8x32xbf16>, vector<32x128xbf16>, vector<8x128xf32> -> vector<8x128xf32>
    %74 = arith.addf %71, %73 : vector<8x128xf32>
    %75 = arith.negf %74 : vector<8x128xf32>
    %76 = math.exp %75 : vector<8x128xf32>
    %cst_34 = arith.constant 1.000000e+00 : f32
    %77 = vector.broadcast %cst_34 : f32 to vector<8x128xf32>
    %78 = arith.addf %77, %76 : vector<8x128xf32>
    %79 = arith.divf %77, %78 : vector<8x128xf32>
    %80 = vector.extract_strided_slice %79 {offsets = [0, 0], sizes = [8, 32], strides = [1, 1]} : vector<8x128xf32> to vector<8x32xf32>
    %81 = vector.extract_strided_slice %79 {offsets = [0, 32], sizes = [8, 32], strides = [1, 1]} : vector<8x128xf32> to vector<8x32xf32>
    %82 = vector.extract_strided_slice %79 {offsets = [0, 64], sizes = [8, 32], strides = [1, 1]} : vector<8x128xf32> to vector<8x32xf32>
    %cst_35 = arith.constant 2.000000e+00 : f32
    %83 = vector.broadcast %cst_35 : f32 to vector<8x32xf32>
    %84 = arith.mulf %83, %82 : vector<8x32xf32>
    %cst_36 = arith.constant 1.000000e+00 : f32
    %85 = vector.broadcast %cst_36 : f32 to vector<8x32xf32>
    %86 = arith.subf %84, %85 : vector<8x32xf32>
    %87 = vector.extract_strided_slice %79 {offsets = [0, 96], sizes = [8, 32], strides = [1, 1]} : vector<8x128xf32> to vector<8x32xf32>
    %88 = arith.mulf %81, %43 : vector<8x32xf32>
    %89 = arith.mulf %80, %86 : vector<8x32xf32>
    %90 = arith.addf %88, %89 : vector<8x32xf32>
    %91 = math.tanh %90 : vector<8x32xf32>
    %92 = arith.mulf %87, %91 : vector<8x32xf32>
    %93 = vector.extract_strided_slice %70 {offsets = [8, 0], sizes = [8, 128], strides = [1, 1]} : vector<16x128xf32> to vector<8x128xf32>
    %94 = arith.truncf %67 : vector<8x32xf32> to vector<8x32xbf16>
    %cst_37 = arith.constant dense<0.000000e+00> : vector<8x128xf32>
    %95 = tpu.matmul %94, %16, %cst_37 {dimension_numbers = #tpu.dot_dimension_numbers<[1], [0], [0], [1], [0, 0, 1, 1], [], []>} : vector<8x32xbf16>, vector<32x128xbf16>, vector<8x128xf32> -> vector<8x128xf32>
    %96 = arith.addf %93, %95 : vector<8x128xf32>
    %97 = arith.negf %96 : vector<8x128xf32>
    %98 = math.exp %97 : vector<8x128xf32>
    %cst_38 = arith.constant 1.000000e+00 : f32
    %99 = vector.broadcast %cst_38 : f32 to vector<8x128xf32>
    %100 = arith.addf %99, %98 : vector<8x128xf32>
    %101 = arith.divf %99, %100 : vector<8x128xf32>
    %102 = vector.extract_strided_slice %101 {offsets = [0, 0], sizes = [8, 32], strides = [1, 1]} : vector<8x128xf32> to vector<8x32xf32>
    %103 = vector.extract_strided_slice %101 {offsets = [0, 32], sizes = [8, 32], strides = [1, 1]} : vector<8x128xf32> to vector<8x32xf32>
    %104 = vector.extract_strided_slice %101 {offsets = [0, 64], sizes = [8, 32], strides = [1, 1]} : vector<8x128xf32> to vector<8x32xf32>
    %cst_39 = arith.constant 2.000000e+00 : f32
    %105 = vector.broadcast %cst_39 : f32 to vector<8x32xf32>
    %106 = arith.mulf %105, %104 : vector<8x32xf32>
    %cst_40 = arith.constant 1.000000e+00 : f32
    %107 = vector.broadcast %cst_40 : f32 to vector<8x32xf32>
    %108 = arith.subf %106, %107 : vector<8x32xf32>
    %109 = vector.extract_strided_slice %101 {offsets = [0, 96], sizes = [8, 32], strides = [1, 1]} : vector<8x128xf32> to vector<8x32xf32>
    %110 = arith.mulf %103, %65 : vector<8x32xf32>
    %111 = arith.mulf %102, %108 : vector<8x32xf32>
    %112 = arith.addf %110, %111 : vector<8x32xf32>
    %113 = math.tanh %112 : vector<8x32xf32>
    %114 = arith.mulf %109, %113 : vector<8x32xf32>
    %c2_i32 = arith.constant 2 : i32
    %115 = arith.index_cast %c2_i32 : i32 to index
    %c0_41 = arith.constant 0 : index
    %c0_42 = arith.constant 0 : index
    %116 = vector.load %arg10[%115, %c0_41, %c0_42] : memref<8x16x128xf32, #tpu.memory_space<vmem>>, vector<1x16x128xf32>
    %117 = vector.shape_cast %116 : vector<1x16x128xf32> to vector<16x128xf32>
    %118 = vector.extract_strided_slice %117 {offsets = [0, 0], sizes = [8, 128], strides = [1, 1]} : vector<16x128xf32> to vector<8x128xf32>
    %119 = arith.truncf %92 : vector<8x32xf32> to vector<8x32xbf16>
    %cst_43 = arith.constant dense<0.000000e+00> : vector<8x128xf32>
    %120 = tpu.matmul %119, %16, %cst_43 {dimension_numbers = #tpu.dot_dimension_numbers<[1], [0], [0], [1], [0, 0, 1, 1], [], []>} : vector<8x32xbf16>, vector<32x128xbf16>, vector<8x128xf32> -> vector<8x128xf32>
    %121 = arith.addf %118, %120 : vector<8x128xf32>
    %122 = arith.negf %121 : vector<8x128xf32>
    %123 = math.exp %122 : vector<8x128xf32>
    %cst_44 = arith.constant 1.000000e+00 : f32
    %124 = vector.broadcast %cst_44 : f32 to vector<8x128xf32>
    %125 = arith.addf %124, %123 : vector<8x128xf32>
    %126 = arith.divf %124, %125 : vector<8x128xf32>
    %127 = vector.extract_strided_slice %126 {offsets = [0, 0], sizes = [8, 32], strides = [1, 1]} : vector<8x128xf32> to vector<8x32xf32>
    %128 = vector.extract_strided_slice %126 {offsets = [0, 32], sizes = [8, 32], strides = [1, 1]} : vector<8x128xf32> to vector<8x32xf32>
    %129 = vector.extract_strided_slice %126 {offsets = [0, 64], sizes = [8, 32], strides = [1, 1]} : vector<8x128xf32> to vector<8x32xf32>
    %cst_45 = arith.constant 2.000000e+00 : f32
    %130 = vector.broadcast %cst_45 : f32 to vector<8x32xf32>
    %131 = arith.mulf %130, %129 : vector<8x32xf32>
    %cst_46 = arith.constant 1.000000e+00 : f32
    %132 = vector.broadcast %cst_46 : f32 to vector<8x32xf32>
    %133 = arith.subf %131, %132 : vector<8x32xf32>
    %134 = vector.extract_strided_slice %126 {offsets = [0, 96], sizes = [8, 32], strides = [1, 1]} : vector<8x128xf32> to vector<8x32xf32>
    %135 = arith.mulf %128, %90 : vector<8x32xf32>
    %136 = arith.mulf %127, %133 : vector<8x32xf32>
    %137 = arith.addf %135, %136 : vector<8x32xf32>
    %138 = math.tanh %137 : vector<8x32xf32>
    %139 = arith.mulf %134, %138 : vector<8x32xf32>
    %140 = vector.extract_strided_slice %117 {offsets = [8, 0], sizes = [8, 128], strides = [1, 1]} : vector<16x128xf32> to vector<8x128xf32>
    %141 = arith.truncf %114 : vector<8x32xf32> to vector<8x32xbf16>
    %cst_47 = arith.constant dense<0.000000e+00> : vector<8x128xf32>
    %142 = tpu.matmul %141, %16, %cst_47 {dimension_numbers = #tpu.dot_dimension_numbers<[1], [0], [0], [1], [0, 0, 1, 1], [], []>} : vector<8x32xbf16>, vector<32x128xbf16>, vector<8x128xf32> -> vector<8x128xf32>
    %143 = arith.addf %140, %142 : vector<8x128xf32>
    %144 = arith.negf %143 : vector<8x128xf32>
    %145 = math.exp %144 : vector<8x128xf32>
    %cst_48 = arith.constant 1.000000e+00 : f32
    %146 = vector.broadcast %cst_48 : f32 to vector<8x128xf32>
    %147 = arith.addf %146, %145 : vector<8x128xf32>
    %148 = arith.divf %146, %147 : vector<8x128xf32>
    %149 = vector.extract_strided_slice %148 {offsets = [0, 0], sizes = [8, 32], strides = [1, 1]} : vector<8x128xf32> to vector<8x32xf32>
    %150 = vector.extract_strided_slice %148 {offsets = [0, 32], sizes = [8, 32], strides = [1, 1]} : vector<8x128xf32> to vector<8x32xf32>
    %151 = vector.extract_strided_slice %148 {offsets = [0, 64], sizes = [8, 32], strides = [1, 1]} : vector<8x128xf32> to vector<8x32xf32>
    %cst_49 = arith.constant 2.000000e+00 : f32
    %152 = vector.broadcast %cst_49 : f32 to vector<8x32xf32>
    %153 = arith.mulf %152, %151 : vector<8x32xf32>
    %cst_50 = arith.constant 1.000000e+00 : f32
    %154 = vector.broadcast %cst_50 : f32 to vector<8x32xf32>
    %155 = arith.subf %153, %154 : vector<8x32xf32>
    %156 = vector.extract_strided_slice %148 {offsets = [0, 96], sizes = [8, 32], strides = [1, 1]} : vector<8x128xf32> to vector<8x32xf32>
    %157 = arith.mulf %150, %112 : vector<8x32xf32>
    %158 = arith.mulf %149, %155 : vector<8x32xf32>
    %159 = arith.addf %157, %158 : vector<8x32xf32>
    %160 = math.tanh %159 : vector<8x32xf32>
    %161 = arith.mulf %156, %160 : vector<8x32xf32>
    %c3_i32 = arith.constant 3 : i32
    %162 = arith.index_cast %c3_i32 : i32 to index
    %c0_51 = arith.constant 0 : index
    %c0_52 = arith.constant 0 : index
    %163 = vector.load %arg10[%162, %c0_51, %c0_52] : memref<8x16x128xf32, #tpu.memory_space<vmem>>, vector<1x16x128xf32>
    %164 = vector.shape_cast %163 : vector<1x16x128xf32> to vector<16x128xf32>
    %165 = vector.extract_strided_slice %164 {offsets = [0, 0], sizes = [8, 128], strides = [1, 1]} : vector<16x128xf32> to vector<8x128xf32>
    %166 = arith.truncf %139 : vector<8x32xf32> to vector<8x32xbf16>
    %cst_53 = arith.constant dense<0.000000e+00> : vector<8x128xf32>
    %167 = tpu.matmul %166, %16, %cst_53 {dimension_numbers = #tpu.dot_dimension_numbers<[1], [0], [0], [1], [0, 0, 1, 1], [], []>} : vector<8x32xbf16>, vector<32x128xbf16>, vector<8x128xf32> -> vector<8x128xf32>
    %168 = arith.addf %165, %167 : vector<8x128xf32>
    %169 = arith.negf %168 : vector<8x128xf32>
    %170 = math.exp %169 : vector<8x128xf32>
    %cst_54 = arith.constant 1.000000e+00 : f32
    %171 = vector.broadcast %cst_54 : f32 to vector<8x128xf32>
    %172 = arith.addf %171, %170 : vector<8x128xf32>
    %173 = arith.divf %171, %172 : vector<8x128xf32>
    %174 = vector.extract_strided_slice %173 {offsets = [0, 0], sizes = [8, 32], strides = [1, 1]} : vector<8x128xf32> to vector<8x32xf32>
    %175 = vector.extract_strided_slice %173 {offsets = [0, 32], sizes = [8, 32], strides = [1, 1]} : vector<8x128xf32> to vector<8x32xf32>
    %176 = vector.extract_strided_slice %173 {offsets = [0, 64], sizes = [8, 32], strides = [1, 1]} : vector<8x128xf32> to vector<8x32xf32>
    %cst_55 = arith.constant 2.000000e+00 : f32
    %177 = vector.broadcast %cst_55 : f32 to vector<8x32xf32>
    %178 = arith.mulf %177, %176 : vector<8x32xf32>
    %cst_56 = arith.constant 1.000000e+00 : f32
    %179 = vector.broadcast %cst_56 : f32 to vector<8x32xf32>
    %180 = arith.subf %178, %179 : vector<8x32xf32>
    %181 = vector.extract_strided_slice %173 {offsets = [0, 96], sizes = [8, 32], strides = [1, 1]} : vector<8x128xf32> to vector<8x32xf32>
    %182 = arith.mulf %175, %137 : vector<8x32xf32>
    %183 = arith.mulf %174, %180 : vector<8x32xf32>
    %184 = arith.addf %182, %183 : vector<8x32xf32>
    %185 = math.tanh %184 : vector<8x32xf32>
    %186 = arith.mulf %181, %185 : vector<8x32xf32>
    %187 = vector.extract_strided_slice %164 {offsets = [8, 0], sizes = [8, 128], strides = [1, 1]} : vector<16x128xf32> to vector<8x128xf32>
    %188 = arith.truncf %161 : vector<8x32xf32> to vector<8x32xbf16>
    %cst_57 = arith.constant dense<0.000000e+00> : vector<8x128xf32>
    %189 = tpu.matmul %188, %16, %cst_57 {dimension_numbers = #tpu.dot_dimension_numbers<[1], [0], [0], [1], [0, 0, 1, 1], [], []>} : vector<8x32xbf16>, vector<32x128xbf16>, vector<8x128xf32> -> vector<8x128xf32>
    %190 = arith.addf %187, %189 : vector<8x128xf32>
    %191 = arith.negf %190 : vector<8x128xf32>
    %192 = math.exp %191 : vector<8x128xf32>
    %cst_58 = arith.constant 1.000000e+00 : f32
    %193 = vector.broadcast %cst_58 : f32 to vector<8x128xf32>
    %194 = arith.addf %193, %192 : vector<8x128xf32>
    %195 = arith.divf %193, %194 : vector<8x128xf32>
    %196 = vector.extract_strided_slice %195 {offsets = [0, 0], sizes = [8, 32], strides = [1, 1]} : vector<8x128xf32> to vector<8x32xf32>
    %197 = vector.extract_strided_slice %195 {offsets = [0, 32], sizes = [8, 32], strides = [1, 1]} : vector<8x128xf32> to vector<8x32xf32>
    %198 = vector.extract_strided_slice %195 {offsets = [0, 64], sizes = [8, 32], strides = [1, 1]} : vector<8x128xf32> to vector<8x32xf32>
    %cst_59 = arith.constant 2.000000e+00 : f32
    %199 = vector.broadcast %cst_59 : f32 to vector<8x32xf32>
    %200 = arith.mulf %199, %198 : vector<8x32xf32>
    %cst_60 = arith.constant 1.000000e+00 : f32
    %201 = vector.broadcast %cst_60 : f32 to vector<8x32xf32>
    %202 = arith.subf %200, %201 : vector<8x32xf32>
    %203 = vector.extract_strided_slice %195 {offsets = [0, 96], sizes = [8, 32], strides = [1, 1]} : vector<8x128xf32> to vector<8x32xf32>
    %204 = arith.mulf %197, %159 : vector<8x32xf32>
    %205 = arith.mulf %196, %202 : vector<8x32xf32>
    %206 = arith.addf %204, %205 : vector<8x32xf32>
    %207 = math.tanh %206 : vector<8x32xf32>
    %208 = arith.mulf %203, %207 : vector<8x32xf32>
    %c4_i32 = arith.constant 4 : i32
    %209 = arith.index_cast %c4_i32 : i32 to index
    %c0_61 = arith.constant 0 : index
    %c0_62 = arith.constant 0 : index
    %210 = vector.load %arg10[%209, %c0_61, %c0_62] : memref<8x16x128xf32, #tpu.memory_space<vmem>>, vector<1x16x128xf32>
    %211 = vector.shape_cast %210 : vector<1x16x128xf32> to vector<16x128xf32>
    %212 = vector.extract_strided_slice %211 {offsets = [0, 0], sizes = [8, 128], strides = [1, 1]} : vector<16x128xf32> to vector<8x128xf32>
    %213 = arith.truncf %186 : vector<8x32xf32> to vector<8x32xbf16>
    %cst_63 = arith.constant dense<0.000000e+00> : vector<8x128xf32>
    %214 = tpu.matmul %213, %16, %cst_63 {dimension_numbers = #tpu.dot_dimension_numbers<[1], [0], [0], [1], [0, 0, 1, 1], [], []>} : vector<8x32xbf16>, vector<32x128xbf16>, vector<8x128xf32> -> vector<8x128xf32>
    %215 = arith.addf %212, %214 : vector<8x128xf32>
    %216 = arith.negf %215 : vector<8x128xf32>
    %217 = math.exp %216 : vector<8x128xf32>
    %cst_64 = arith.constant 1.000000e+00 : f32
    %218 = vector.broadcast %cst_64 : f32 to vector<8x128xf32>
    %219 = arith.addf %218, %217 : vector<8x128xf32>
    %220 = arith.divf %218, %219 : vector<8x128xf32>
    %221 = vector.extract_strided_slice %220 {offsets = [0, 0], sizes = [8, 32], strides = [1, 1]} : vector<8x128xf32> to vector<8x32xf32>
    %222 = vector.extract_strided_slice %220 {offsets = [0, 32], sizes = [8, 32], strides = [1, 1]} : vector<8x128xf32> to vector<8x32xf32>
    %223 = vector.extract_strided_slice %220 {offsets = [0, 64], sizes = [8, 32], strides = [1, 1]} : vector<8x128xf32> to vector<8x32xf32>
    %cst_65 = arith.constant 2.000000e+00 : f32
    %224 = vector.broadcast %cst_65 : f32 to vector<8x32xf32>
    %225 = arith.mulf %224, %223 : vector<8x32xf32>
    %cst_66 = arith.constant 1.000000e+00 : f32
    %226 = vector.broadcast %cst_66 : f32 to vector<8x32xf32>
    %227 = arith.subf %225, %226 : vector<8x32xf32>
    %228 = vector.extract_strided_slice %220 {offsets = [0, 96], sizes = [8, 32], strides = [1, 1]} : vector<8x128xf32> to vector<8x32xf32>
    %229 = arith.mulf %222, %184 : vector<8x32xf32>
    %230 = arith.mulf %221, %227 : vector<8x32xf32>
    %231 = arith.addf %229, %230 : vector<8x32xf32>
    %232 = math.tanh %231 : vector<8x32xf32>
    %233 = arith.mulf %228, %232 : vector<8x32xf32>
    %234 = vector.extract_strided_slice %211 {offsets = [8, 0], sizes = [8, 128], strides = [1, 1]} : vector<16x128xf32> to vector<8x128xf32>
    %235 = arith.truncf %208 : vector<8x32xf32> to vector<8x32xbf16>
    %cst_67 = arith.constant dense<0.000000e+00> : vector<8x128xf32>
    %236 = tpu.matmul %235, %16, %cst_67 {dimension_numbers = #tpu.dot_dimension_numbers<[1], [0], [0], [1], [0, 0, 1, 1], [], []>} : vector<8x32xbf16>, vector<32x128xbf16>, vector<8x128xf32> -> vector<8x128xf32>
    %237 = arith.addf %234, %236 : vector<8x128xf32>
    %238 = arith.negf %237 : vector<8x128xf32>
    %239 = math.exp %238 : vector<8x128xf32>
    %cst_68 = arith.constant 1.000000e+00 : f32
    %240 = vector.broadcast %cst_68 : f32 to vector<8x128xf32>
    %241 = arith.addf %240, %239 : vector<8x128xf32>
    %242 = arith.divf %240, %241 : vector<8x128xf32>
    %243 = vector.extract_strided_slice %242 {offsets = [0, 0], sizes = [8, 32], strides = [1, 1]} : vector<8x128xf32> to vector<8x32xf32>
    %244 = vector.extract_strided_slice %242 {offsets = [0, 32], sizes = [8, 32], strides = [1, 1]} : vector<8x128xf32> to vector<8x32xf32>
    %245 = vector.extract_strided_slice %242 {offsets = [0, 64], sizes = [8, 32], strides = [1, 1]} : vector<8x128xf32> to vector<8x32xf32>
    %cst_69 = arith.constant 2.000000e+00 : f32
    %246 = vector.broadcast %cst_69 : f32 to vector<8x32xf32>
    %247 = arith.mulf %246, %245 : vector<8x32xf32>
    %cst_70 = arith.constant 1.000000e+00 : f32
    %248 = vector.broadcast %cst_70 : f32 to vector<8x32xf32>
    %249 = arith.subf %247, %248 : vector<8x32xf32>
    %250 = vector.extract_strided_slice %242 {offsets = [0, 96], sizes = [8, 32], strides = [1, 1]} : vector<8x128xf32> to vector<8x32xf32>
    %251 = arith.mulf %244, %206 : vector<8x32xf32>
    %252 = arith.mulf %243, %249 : vector<8x32xf32>
    %253 = arith.addf %251, %252 : vector<8x32xf32>
    %254 = math.tanh %253 : vector<8x32xf32>
    %255 = arith.mulf %250, %254 : vector<8x32xf32>
    %c5_i32 = arith.constant 5 : i32
    %256 = arith.index_cast %c5_i32 : i32 to index
    %c0_71 = arith.constant 0 : index
    %c0_72 = arith.constant 0 : index
    %257 = vector.load %arg10[%256, %c0_71, %c0_72] : memref<8x16x128xf32, #tpu.memory_space<vmem>>, vector<1x16x128xf32>
    %258 = vector.shape_cast %257 : vector<1x16x128xf32> to vector<16x128xf32>
    %259 = vector.extract_strided_slice %258 {offsets = [0, 0], sizes = [8, 128], strides = [1, 1]} : vector<16x128xf32> to vector<8x128xf32>
    %260 = arith.truncf %233 : vector<8x32xf32> to vector<8x32xbf16>
    %cst_73 = arith.constant dense<0.000000e+00> : vector<8x128xf32>
    %261 = tpu.matmul %260, %16, %cst_73 {dimension_numbers = #tpu.dot_dimension_numbers<[1], [0], [0], [1], [0, 0, 1, 1], [], []>} : vector<8x32xbf16>, vector<32x128xbf16>, vector<8x128xf32> -> vector<8x128xf32>
    %262 = arith.addf %259, %261 : vector<8x128xf32>
    %263 = arith.negf %262 : vector<8x128xf32>
    %264 = math.exp %263 : vector<8x128xf32>
    %cst_74 = arith.constant 1.000000e+00 : f32
    %265 = vector.broadcast %cst_74 : f32 to vector<8x128xf32>
    %266 = arith.addf %265, %264 : vector<8x128xf32>
    %267 = arith.divf %265, %266 : vector<8x128xf32>
    %268 = vector.extract_strided_slice %267 {offsets = [0, 0], sizes = [8, 32], strides = [1, 1]} : vector<8x128xf32> to vector<8x32xf32>
    %269 = vector.extract_strided_slice %267 {offsets = [0, 32], sizes = [8, 32], strides = [1, 1]} : vector<8x128xf32> to vector<8x32xf32>
    %270 = vector.extract_strided_slice %267 {offsets = [0, 64], sizes = [8, 32], strides = [1, 1]} : vector<8x128xf32> to vector<8x32xf32>
    %cst_75 = arith.constant 2.000000e+00 : f32
    %271 = vector.broadcast %cst_75 : f32 to vector<8x32xf32>
    %272 = arith.mulf %271, %270 : vector<8x32xf32>
    %cst_76 = arith.constant 1.000000e+00 : f32
    %273 = vector.broadcast %cst_76 : f32 to vector<8x32xf32>
    %274 = arith.subf %272, %273 : vector<8x32xf32>
    %275 = vector.extract_strided_slice %267 {offsets = [0, 96], sizes = [8, 32], strides = [1, 1]} : vector<8x128xf32> to vector<8x32xf32>
    %276 = arith.mulf %269, %231 : vector<8x32xf32>
    %277 = arith.mulf %268, %274 : vector<8x32xf32>
    %278 = arith.addf %276, %277 : vector<8x32xf32>
    %279 = math.tanh %278 : vector<8x32xf32>
    %280 = arith.mulf %275, %279 : vector<8x32xf32>
    %281 = vector.extract_strided_slice %258 {offsets = [8, 0], sizes = [8, 128], strides = [1, 1]} : vector<16x128xf32> to vector<8x128xf32>
    %282 = arith.truncf %255 : vector<8x32xf32> to vector<8x32xbf16>
    %cst_77 = arith.constant dense<0.000000e+00> : vector<8x128xf32>
    %283 = tpu.matmul %282, %16, %cst_77 {dimension_numbers = #tpu.dot_dimension_numbers<[1], [0], [0], [1], [0, 0, 1, 1], [], []>} : vector<8x32xbf16>, vector<32x128xbf16>, vector<8x128xf32> -> vector<8x128xf32>
    %284 = arith.addf %281, %283 : vector<8x128xf32>
    %285 = arith.negf %284 : vector<8x128xf32>
    %286 = math.exp %285 : vector<8x128xf32>
    %cst_78 = arith.constant 1.000000e+00 : f32
    %287 = vector.broadcast %cst_78 : f32 to vector<8x128xf32>
    %288 = arith.addf %287, %286 : vector<8x128xf32>
    %289 = arith.divf %287, %288 : vector<8x128xf32>
    %290 = vector.extract_strided_slice %289 {offsets = [0, 0], sizes = [8, 32], strides = [1, 1]} : vector<8x128xf32> to vector<8x32xf32>
    %291 = vector.extract_strided_slice %289 {offsets = [0, 32], sizes = [8, 32], strides = [1, 1]} : vector<8x128xf32> to vector<8x32xf32>
    %292 = vector.extract_strided_slice %289 {offsets = [0, 64], sizes = [8, 32], strides = [1, 1]} : vector<8x128xf32> to vector<8x32xf32>
    %cst_79 = arith.constant 2.000000e+00 : f32
    %293 = vector.broadcast %cst_79 : f32 to vector<8x32xf32>
    %294 = arith.mulf %293, %292 : vector<8x32xf32>
    %cst_80 = arith.constant 1.000000e+00 : f32
    %295 = vector.broadcast %cst_80 : f32 to vector<8x32xf32>
    %296 = arith.subf %294, %295 : vector<8x32xf32>
    %297 = vector.extract_strided_slice %289 {offsets = [0, 96], sizes = [8, 32], strides = [1, 1]} : vector<8x128xf32> to vector<8x32xf32>
    %298 = arith.mulf %291, %253 : vector<8x32xf32>
    %299 = arith.mulf %290, %296 : vector<8x32xf32>
    %300 = arith.addf %298, %299 : vector<8x32xf32>
    %301 = math.tanh %300 : vector<8x32xf32>
    %302 = arith.mulf %297, %301 : vector<8x32xf32>
    %c6_i32 = arith.constant 6 : i32
    %303 = arith.index_cast %c6_i32 : i32 to index
    %c0_81 = arith.constant 0 : index
    %c0_82 = arith.constant 0 : index
    %304 = vector.load %arg10[%303, %c0_81, %c0_82] : memref<8x16x128xf32, #tpu.memory_space<vmem>>, vector<1x16x128xf32>
    %305 = vector.shape_cast %304 : vector<1x16x128xf32> to vector<16x128xf32>
    %306 = vector.extract_strided_slice %305 {offsets = [0, 0], sizes = [8, 128], strides = [1, 1]} : vector<16x128xf32> to vector<8x128xf32>
    %307 = arith.truncf %280 : vector<8x32xf32> to vector<8x32xbf16>
    %cst_83 = arith.constant dense<0.000000e+00> : vector<8x128xf32>
    %308 = tpu.matmul %307, %16, %cst_83 {dimension_numbers = #tpu.dot_dimension_numbers<[1], [0], [0], [1], [0, 0, 1, 1], [], []>} : vector<8x32xbf16>, vector<32x128xbf16>, vector<8x128xf32> -> vector<8x128xf32>
    %309 = arith.addf %306, %308 : vector<8x128xf32>
    %310 = arith.negf %309 : vector<8x128xf32>
    %311 = math.exp %310 : vector<8x128xf32>
    %cst_84 = arith.constant 1.000000e+00 : f32
    %312 = vector.broadcast %cst_84 : f32 to vector<8x128xf32>
    %313 = arith.addf %312, %311 : vector<8x128xf32>
    %314 = arith.divf %312, %313 : vector<8x128xf32>
    %315 = vector.extract_strided_slice %314 {offsets = [0, 0], sizes = [8, 32], strides = [1, 1]} : vector<8x128xf32> to vector<8x32xf32>
    %316 = vector.extract_strided_slice %314 {offsets = [0, 32], sizes = [8, 32], strides = [1, 1]} : vector<8x128xf32> to vector<8x32xf32>
    %317 = vector.extract_strided_slice %314 {offsets = [0, 64], sizes = [8, 32], strides = [1, 1]} : vector<8x128xf32> to vector<8x32xf32>
    %cst_85 = arith.constant 2.000000e+00 : f32
    %318 = vector.broadcast %cst_85 : f32 to vector<8x32xf32>
    %319 = arith.mulf %318, %317 : vector<8x32xf32>
    %cst_86 = arith.constant 1.000000e+00 : f32
    %320 = vector.broadcast %cst_86 : f32 to vector<8x32xf32>
    %321 = arith.subf %319, %320 : vector<8x32xf32>
    %322 = vector.extract_strided_slice %314 {offsets = [0, 96], sizes = [8, 32], strides = [1, 1]} : vector<8x128xf32> to vector<8x32xf32>
    %323 = arith.mulf %316, %278 : vector<8x32xf32>
    %324 = arith.mulf %315, %321 : vector<8x32xf32>
    %325 = arith.addf %323, %324 : vector<8x32xf32>
    %326 = math.tanh %325 : vector<8x32xf32>
    %327 = arith.mulf %322, %326 : vector<8x32xf32>
    %328 = vector.extract_strided_slice %305 {offsets = [8, 0], sizes = [8, 128], strides = [1, 1]} : vector<16x128xf32> to vector<8x128xf32>
    %329 = arith.truncf %302 : vector<8x32xf32> to vector<8x32xbf16>
    %cst_87 = arith.constant dense<0.000000e+00> : vector<8x128xf32>
    %330 = tpu.matmul %329, %16, %cst_87 {dimension_numbers = #tpu.dot_dimension_numbers<[1], [0], [0], [1], [0, 0, 1, 1], [], []>} : vector<8x32xbf16>, vector<32x128xbf16>, vector<8x128xf32> -> vector<8x128xf32>
    %331 = arith.addf %328, %330 : vector<8x128xf32>
    %332 = arith.negf %331 : vector<8x128xf32>
    %333 = math.exp %332 : vector<8x128xf32>
    %cst_88 = arith.constant 1.000000e+00 : f32
    %334 = vector.broadcast %cst_88 : f32 to vector<8x128xf32>
    %335 = arith.addf %334, %333 : vector<8x128xf32>
    %336 = arith.divf %334, %335 : vector<8x128xf32>
    %337 = vector.extract_strided_slice %336 {offsets = [0, 0], sizes = [8, 32], strides = [1, 1]} : vector<8x128xf32> to vector<8x32xf32>
    %338 = vector.extract_strided_slice %336 {offsets = [0, 32], sizes = [8, 32], strides = [1, 1]} : vector<8x128xf32> to vector<8x32xf32>
    %339 = vector.extract_strided_slice %336 {offsets = [0, 64], sizes = [8, 32], strides = [1, 1]} : vector<8x128xf32> to vector<8x32xf32>
    %cst_89 = arith.constant 2.000000e+00 : f32
    %340 = vector.broadcast %cst_89 : f32 to vector<8x32xf32>
    %341 = arith.mulf %340, %339 : vector<8x32xf32>
    %cst_90 = arith.constant 1.000000e+00 : f32
    %342 = vector.broadcast %cst_90 : f32 to vector<8x32xf32>
    %343 = arith.subf %341, %342 : vector<8x32xf32>
    %344 = vector.extract_strided_slice %336 {offsets = [0, 96], sizes = [8, 32], strides = [1, 1]} : vector<8x128xf32> to vector<8x32xf32>
    %345 = arith.mulf %338, %300 : vector<8x32xf32>
    %346 = arith.mulf %337, %343 : vector<8x32xf32>
    %347 = arith.addf %345, %346 : vector<8x32xf32>
    %348 = math.tanh %347 : vector<8x32xf32>
    %349 = arith.mulf %344, %348 : vector<8x32xf32>
    %c7_i32 = arith.constant 7 : i32
    %350 = arith.index_cast %c7_i32 : i32 to index
    %c0_91 = arith.constant 0 : index
    %c0_92 = arith.constant 0 : index
    %351 = vector.load %arg10[%350, %c0_91, %c0_92] : memref<8x16x128xf32, #tpu.memory_space<vmem>>, vector<1x16x128xf32>
    %352 = vector.shape_cast %351 : vector<1x16x128xf32> to vector<16x128xf32>
    %353 = vector.extract_strided_slice %352 {offsets = [0, 0], sizes = [8, 128], strides = [1, 1]} : vector<16x128xf32> to vector<8x128xf32>
    %354 = arith.truncf %327 : vector<8x32xf32> to vector<8x32xbf16>
    %cst_93 = arith.constant dense<0.000000e+00> : vector<8x128xf32>
    %355 = tpu.matmul %354, %16, %cst_93 {dimension_numbers = #tpu.dot_dimension_numbers<[1], [0], [0], [1], [0, 0, 1, 1], [], []>} : vector<8x32xbf16>, vector<32x128xbf16>, vector<8x128xf32> -> vector<8x128xf32>
    %356 = arith.addf %353, %355 : vector<8x128xf32>
    %357 = arith.negf %356 : vector<8x128xf32>
    %358 = math.exp %357 : vector<8x128xf32>
    %cst_94 = arith.constant 1.000000e+00 : f32
    %359 = vector.broadcast %cst_94 : f32 to vector<8x128xf32>
    %360 = arith.addf %359, %358 : vector<8x128xf32>
    %361 = arith.divf %359, %360 : vector<8x128xf32>
    %362 = vector.extract_strided_slice %361 {offsets = [0, 0], sizes = [8, 32], strides = [1, 1]} : vector<8x128xf32> to vector<8x32xf32>
    %363 = vector.extract_strided_slice %361 {offsets = [0, 32], sizes = [8, 32], strides = [1, 1]} : vector<8x128xf32> to vector<8x32xf32>
    %364 = vector.extract_strided_slice %361 {offsets = [0, 64], sizes = [8, 32], strides = [1, 1]} : vector<8x128xf32> to vector<8x32xf32>
    %cst_95 = arith.constant 2.000000e+00 : f32
    %365 = vector.broadcast %cst_95 : f32 to vector<8x32xf32>
    %366 = arith.mulf %365, %364 : vector<8x32xf32>
    %cst_96 = arith.constant 1.000000e+00 : f32
    %367 = vector.broadcast %cst_96 : f32 to vector<8x32xf32>
    %368 = arith.subf %366, %367 : vector<8x32xf32>
    %369 = vector.extract_strided_slice %361 {offsets = [0, 96], sizes = [8, 32], strides = [1, 1]} : vector<8x128xf32> to vector<8x32xf32>
    %370 = arith.mulf %363, %325 : vector<8x32xf32>
    %371 = arith.mulf %362, %368 : vector<8x32xf32>
    %372 = arith.addf %370, %371 : vector<8x32xf32>
    %373 = math.tanh %372 : vector<8x32xf32>
    %374 = arith.mulf %369, %373 : vector<8x32xf32>
    %375 = vector.extract_strided_slice %352 {offsets = [8, 0], sizes = [8, 128], strides = [1, 1]} : vector<16x128xf32> to vector<8x128xf32>
    %376 = arith.truncf %349 : vector<8x32xf32> to vector<8x32xbf16>
    %cst_97 = arith.constant dense<0.000000e+00> : vector<8x128xf32>
    %377 = tpu.matmul %376, %16, %cst_97 {dimension_numbers = #tpu.dot_dimension_numbers<[1], [0], [0], [1], [0, 0, 1, 1], [], []>} : vector<8x32xbf16>, vector<32x128xbf16>, vector<8x128xf32> -> vector<8x128xf32>
    %378 = arith.addf %375, %377 : vector<8x128xf32>
    %379 = arith.negf %378 : vector<8x128xf32>
    %380 = math.exp %379 : vector<8x128xf32>
    %cst_98 = arith.constant 1.000000e+00 : f32
    %381 = vector.broadcast %cst_98 : f32 to vector<8x128xf32>
    %382 = arith.addf %381, %380 : vector<8x128xf32>
    %383 = arith.divf %381, %382 : vector<8x128xf32>
    %384 = vector.extract_strided_slice %383 {offsets = [0, 0], sizes = [8, 32], strides = [1, 1]} : vector<8x128xf32> to vector<8x32xf32>
    %385 = vector.extract_strided_slice %383 {offsets = [0, 32], sizes = [8, 32], strides = [1, 1]} : vector<8x128xf32> to vector<8x32xf32>
    %386 = vector.extract_strided_slice %383 {offsets = [0, 64], sizes = [8, 32], strides = [1, 1]} : vector<8x128xf32> to vector<8x32xf32>
    %cst_99 = arith.constant 2.000000e+00 : f32
    %387 = vector.broadcast %cst_99 : f32 to vector<8x32xf32>
    %388 = arith.mulf %387, %386 : vector<8x32xf32>
    %cst_100 = arith.constant 1.000000e+00 : f32
    %389 = vector.broadcast %cst_100 : f32 to vector<8x32xf32>
    %390 = arith.subf %388, %389 : vector<8x32xf32>
    %391 = vector.extract_strided_slice %383 {offsets = [0, 96], sizes = [8, 32], strides = [1, 1]} : vector<8x128xf32> to vector<8x32xf32>
    %392 = arith.mulf %385, %347 : vector<8x32xf32>
    %393 = arith.mulf %384, %390 : vector<8x32xf32>
    %394 = arith.addf %392, %393 : vector<8x32xf32>
    %395 = math.tanh %394 : vector<8x32xf32>
    %396 = arith.mulf %391, %395 : vector<8x32xf32>
    %c8_i32 = arith.constant 8 : i32
    %397 = tpu.concatenate %374, %396 in 0 : vector<8x32xf32>, vector<8x32xf32> -> vector<16x32xf32>
    %398 = arith.truncf %397 : vector<16x32xf32> to vector<16x32xbf16>
    %c0_101 = arith.constant 0 : index
    %c0_102 = arith.constant 0 : index
    %399 = vector.load %arg7[%c0_101, %c0_102] : memref<32x128xbf16, #tpu.memory_space<vmem>>, vector<32x128xbf16>
    %cst_103 = arith.constant dense<0.000000e+00> : vector<16x128xf32>
    %400 = tpu.matmul %398, %399, %cst_103 {dimension_numbers = #tpu.dot_dimension_numbers<[1], [0], [0], [1], [0, 0, 1, 1], [], []>} : vector<16x32xbf16>, vector<32x128xbf16>, vector<16x128xf32> -> vector<16x128xf32>
    %c0_104 = arith.constant 0 : index
    %c0_105 = arith.constant 0 : index
    %401 = vector.load %arg8[%c0_104, %c0_105] : memref<1x128xf32, #tpu.memory_space<vmem>>, vector<1x128xf32>
    %402 = vector.broadcast %401 : vector<1x128xf32> to vector<16x128xf32>
    %403 = arith.addf %400, %402 : vector<16x128xf32>
    %c0_106 = arith.constant 0 : index
    %c0_107 = arith.constant 0 : index
    %404 = vector.load %arg9[%c0_106, %c0_107] : memref<16x128xf32, #tpu.memory_space<vmem>>, vector<16x128xf32>
    tpu.vector_store %arg9[%c0_106, %c0_107], %403 {strides = array<i32>} : memref<16x128xf32, #tpu.memory_space<vmem>>, vector<16x128xf32>,
    return
  }
  func.func @transform_0(%arg0: i32) -> (i32, i32, i32) {
    %c0_i32 = arith.constant 0 : i32
    %c0_i32_0 = arith.constant 0 : i32
    %c0_i32_1 = arith.constant 0 : i32
    return %c0_i32, %arg0, %c0_i32_0 : i32, i32, i32
  }
  func.func @transform_1(%arg0: i32) -> (i32, i32, i32) {
    %c0_i32 = arith.constant 0 : i32
    %c0_i32_0 = arith.constant 0 : i32
    %c0_i32_1 = arith.constant 0 : i32
    return %c0_i32, %arg0, %c0_i32_0 : i32, i32, i32
  }
  func.func @transform_2(%arg0: i32) -> (i32, i32) {
    %c0_i32 = arith.constant 0 : i32
    %c0_i32_0 = arith.constant 0 : i32
    %c0_i32_1 = arith.constant 0 : i32
    return %c0_i32, %c0_i32_0 : i32, i32
  }
  func.func @transform_3(%arg0: i32) -> (i32, i32) {
    %c0_i32 = arith.constant 0 : i32
    %c0_i32_0 = arith.constant 0 : i32
    %c0_i32_1 = arith.constant 0 : i32
    return %c0_i32, %c0_i32_0 : i32, i32
  }
  func.func @transform_4(%arg0: i32) -> (i32, i32) {
    %c0_i32 = arith.constant 0 : i32
    %c0_i32_0 = arith.constant 0 : i32
    %c0_i32_1 = arith.constant 0 : i32
    return %c0_i32, %c0_i32_0 : i32, i32
  }
  func.func @transform_5(%arg0: i32) -> (i32, i32) {
    %c0_i32 = arith.constant 0 : i32
    %c0_i32_0 = arith.constant 0 : i32
    %c0_i32_1 = arith.constant 0 : i32
    return %c0_i32, %c0_i32_0 : i32, i32
  }
  func.func @transform_6(%arg0: i32) -> (i32, i32) {
    %c0_i32 = arith.constant 0 : i32
    %c0_i32_0 = arith.constant 0 : i32
    %c0_i32_1 = arith.constant 0 : i32
    return %c0_i32, %c0_i32_0 : i32, i32
  }
  func.func @transform_7(%arg0: i32) -> (i32, i32) {
    %c0_i32 = arith.constant 0 : i32
    %c0_i32_0 = arith.constant 0 : i32
    %c0_i32_1 = arith.constant 0 : i32
    return %c0_i32, %c0_i32_0 : i32, i32
  }
  func.func @transform_8(%arg0: i32) -> (i32, i32) {
    %c0_i32 = arith.constant 0 : i32
    %c0_i32_0 = arith.constant 0 : i32
    return %arg0, %c0_i32 : i32, i32
  }
}

</mosaic_0001>

<bundles_post_ra>
// kernel: tpu_custom_call.1
= control target key start
LH: loop header
LB: loop body
LE: loop exit
PB: predicated region body
PF: predicated region fallthrough
CT: control target
= control target key end

     0   :  { %vm109_vm0 = vcmask 1043456   ;;  %vm84_vm1 = vcmask 64512   ;;  %v2083_v10 = vmov 0.0   ;;  %vm2084_vm2 = vmmov 0   ;;  %s2553_s0 = inlined_call_operand.vmem [shape: f32[8,16,32], index: 0, kind: input, shape index: {}]   ;;  %s2554_s1 = inlined_call_operand.vmem [shape: f32[8,16,8], index: 1, kind: input, shape index: {}]   ;;  %s2555_s2 = inlined_call_operand.vmem [shape: bf16[32,128], index: 2, kind: input, shape index: {}]   ;;  %s2556_s3 = inlined_call_operand.vmem [shape: bf16[8,128], index: 3, kind: input, shape index: {}]   ;;  %s2557_s4 = inlined_call_operand.vmem [shape: bf16[32,128], index: 4, kind: input, shape index: {}]   ;;  %s2558_s5 = inlined_call_operand.vmem [shape: f32[1,128], index: 5, kind: input, shape index: {}]   ;;  %s2559_s6 = inlined_call_operand.vmem [shape: bf16[32,128], index: 6, kind: input, shape index: {}]   ;;  %s2560_s7 = inlined_call_operand.vmem [shape: f32[1,128], index: 7, kind: input, shape index: {}]   ;;  %s2561_s8 = inlined_call_operand.hbm [shape: f32[16,128], index: 8, kind: output, shape index: {}]  }
   0x1   :  { %v83_v0 = vld [vmem:[%s2556_s3] sm:$0xf]  ;;  %v56_v2 = vld [vmem:[%s2554_s1 + $0x8] sm:$0xff]  ;;  %v57_v5 = vld [vmem:[%s2554_s1 + $0x10] sm:$0xff]  ;;  %1804 = vmatprep.subr.bf16.mxu1 %v2083_v10  ;;  %1808 = vmatprep.mubr.msk.bf16.mxu1 %vm2084_vm2, %v2083_v10 }
   0x2   :  { %v55_v1 = vld [vmem:[%s2554_s1] sm:$0xff]  ;;  %1948 = vmatprep.subr.msk.bf16.mxu0 %vm109_vm0, %v83_v0  ;;  %v111_v3 = vsel %vm109_vm0, %v83_v0, 0  ;;  %v58_v6 = vld [vmem:[%s2554_s1 + $0x18] sm:$0xff]  ;;  %v60_v11 = vld [vmem:[%s2554_s1 + $0x28] sm:$0xff] }
   0x3   :  { %v71_v4 = vpack.c.bf16 %v56_v2, %v55_v1  ;;  %1767 = vmatpush3.bf16.msra.mxu0 %v111_v3  ;;  %v72_v7 = vpack.c.bf16 %v58_v6, %v57_v5  ;;  %v1957_v8 = vld [vmem:[%s2555_s2] sm:$0xff]   ;;  %v61_v13 = vld [vmem:[%s2554_s1 + $0x30] sm:$0xff]  ;;  %v62_v14 = vld [vmem:[%s2554_s1 + $0x38] sm:$0xff] }
   0x4   :  { %v59_v9 = vld [vmem:[%s2554_s1 + $0x20] sm:$0xff]  ;;  %1784 = vmatprep.subr.bf16.mxu0 %v1957_v8  ;;  %v1958_v15 = vld [vmem:[%s2555_s2 + $0x8] sm:$0xff]   ;;  %v74_v19 = vpack.c.bf16 %v62_v14, %v61_v13  ;;  %v65_v22 = vld [vmem:[%s2554_s1 + $0x50] sm:$0xff] }
   0x5   :  { %1768 = vmatprep.mubr.msk.bf16.mxu0 %vm84_vm1, %v71_v4  ;;  %v73_v12 = vpack.c.bf16 %v60_v11, %v59_v9  ;;  %v63_v16 = vld [vmem:[%s2554_s1 + $0x40] sm:$0xff]  ;;  %v64_v17 = vld [vmem:[%s2554_s1 + $0x48] sm:$0xff]  ;;  %v66_v23 = vld [vmem:[%s2554_s1 + $0x58] sm:$0xff] }
   0x6   :  { %1769 = vmatmul.mubr.msk.bf16.vlgmr.msra.gmra.mrb[0].mxu0 %vm84_vm1, %v72_v7  ;;  %v2184_v18 = vld [vmem:[%s2557_s4] sm:$0xff]   ;;  %v75_v20 = vpack.c.bf16 %v64_v17, %v63_v16  ;;  %v2190_v21 = vld [vmem:[%s2557_s4 + $0x8] sm:$0xff]  }
   0x7   :  { %1785 = vmatpush3.bf16.msra.mxu0 %v1957_v8  ;;  %1772 = vmatprep.mubr.msk.bf16.mxu0 %vm84_vm1, %v73_v12  ;;  %v67_v24 = vld [vmem:[%s2554_s1 + $0x60] sm:$0xff]  ;;  %v68_v25 = vld [vmem:[%s2554_s1 + $0x68] sm:$0xff] }
   0x8   :  { %1786 = vmatprep.subr.bf16.mxu0 %v1958_v15  ;;  %1805 = vmatpush3.bf16.msra.mxu1 %v2184_v18 }
   0x9   :  { %1806 = vmatprep.subr.bf16.mxu1 %v2083_v10 }
   0xb   :  { %1787 = vmatpush3.bf16.msra.mxu0 %v1958_v15 }
   0xc   :  { %1868 = vmatprep.subr.bf16.mxu0 %v2083_v10  ;;  %1807 = vmatpush3.bf16.msra.mxu1 %v2190_v21 }
   0xd   :  { %1812 = vmatprep.subr.bf16.mxu1 %v2083_v10 }
   0xe   :  { %1773 = vmatmul.mubr.msk.bf16.gmra.mrb[4].mxu0 %vm84_vm1, %v74_v19 }
   0xf   :  { %1776 = vmatprep.mubr.msk.bf16.mxu0 %vm84_vm1, %v75_v20 }
  0x10   :  { %13 = vsyncpa [#allocation4], 0  ;;  %v76_v26 = vpack.c.bf16 %v66_v23, %v65_v22  ;;  %v2085_v27 = vmov 0   ;;  %v77_v28 = vpack.c.bf16 %v68_v25, %v67_v24  ;;  %v69_v29 = vld [vmem:[%s2554_s1 + $0x70] sm:$0xff]  ;;  %v70_v30 = vld [vmem:[%s2554_s1 + $0x78] sm:$0xff]  ;;  %vm222_vm3 = vcmask 261120  }
  0x11   :  { %1809 = vmatmul.mubr.bf16.vlgmr.msra.gmra.mrb[0].mxu1 %v2085_v27  ;;  %v31_v31 = vld [vmem:[%s2553_s0] sm:$0xff]  ;;  %v32_v32 = vld [vmem:[%s2553_s0 + $0x8] sm:$0xff]  ;;  %v78_v33 = vpack.c.bf16 %v70_v30, %v69_v29  ;;  %v33_v35 = vld [vmem:[%s2553_s0 + $0x10] sm:$0xff] }
  0x12   :  { %1813 = vmatpush3.bf16.msra.mxu1 %v2184_v18  ;;  %1816 = vmatprep.mubr.msk.bf16.mxu1 %vm2084_vm2, %v2083_v10  ;;  %v47_v34 = vpack.c.bf16 %v32_v32, %v31_v31  ;;  %v34_v36 = vld [vmem:[%s2553_s0 + $0x18] sm:$0xff]  ;;  %v35_v37 = vld [vmem:[%s2553_s0 + $0x20] sm:$0xff]  ;;  %v36_v38 = vld [vmem:[%s2553_s0 + $0x28] sm:$0xff] }
  0x13   :  { %1814 = vmatprep.subr.bf16.mxu1 %v2083_v10  ;;  %v48_v39 = vpack.c.bf16 %v34_v36, %v33_v35  ;;  %v49_v40 = vpack.c.bf16 %v36_v38, %v35_v37  ;;  %v37_v41 = vld [vmem:[%s2553_s0 + $0x30] sm:$0xff]  ;;  %v38_v42 = vld [vmem:[%s2553_s0 + $0x38] sm:$0xff]  ;;  %v39_v43 = vld [vmem:[%s2553_s0 + $0x40] sm:$0xff] }
  0x14   :  { %v40_v44 = vld [vmem:[%s2553_s0 + $0x48] sm:$0xff]  ;;  %v50_v45 = vpack.c.bf16 %v38_v42, %v37_v41  ;;  %v41_v47 = vld [vmem:[%s2553_s0 + $0x50] sm:$0xff]  ;;  %v42_v48 = vld [vmem:[%s2553_s0 + $0x58] sm:$0xff] }
  0x15   :  { %v51_v46 = vpack.c.bf16 %v40_v44, %v39_v43  ;;  %v43_v49 = vld [vmem:[%s2553_s0 + $0x60] sm:$0xff]  ;;  %v44_v50 = vld [vmem:[%s2553_s0 + $0x68] sm:$0xff]  ;;  %v52_v51 = vpack.c.bf16 %v42_v48, %v41_v47  ;;  %v45_v53 = vld [vmem:[%s2553_s0 + $0x70] sm:$0xff] }
  0x16   :  { %1777 = vmatmul.mubr.msk.bf16.gmra.mrb[8].mxu0 %vm84_vm1, %v76_v26  ;;  %1815 = vmatpush3.bf16.msra.mxu1 %v2190_v21  ;;  %v53_v52 = vpack.c.bf16 %v44_v50, %v43_v49  ;;  %v46_v54 = vld [vmem:[%s2553_s0 + $0x78] sm:$0xff]  ;;  %v1646_v60 = vld [vmem:[%s2558_s5] ss:$0 sm:$0xff]  ;;  %s2086_s0 = smov 64   ;;  %s2087_s5 = smov 32  }
  0x17   :  { %1780 = vmatprep.mubr.msk.bf16.mxu0 %vm84_vm1, %v77_v28  ;;  %1820 = vmatprep.subr.bf16.mxu1 %v2083_v10  ;;  %v54_v55 = vpack.c.bf16 %v46_v54, %v45_v53 }
  0x1e   :  { %1781 = vmatmul.mubr.msk.bf16.gmra.mrb[12].mxu0 %vm84_vm1, %v78_v33 }
  0x1f   :  { %1788 = vmatprep.mubr.msk.bf16.mxu0 %vm222_vm3, %v47_v34 }
  0x26   :  { %1789 = vmatmul.mubr.msk.bf16.vlgmr.msra.gmra.mrb[0].mxu0 %vm222_vm3, %v48_v39 }
  0x27   :  { %1792 = vmatprep.mubr.msk.bf16.mxu0 %vm222_vm3, %v49_v40  ;;  %1869 = vmatpush3.bf16.msra.mxu0 %v2184_v18 }
  0x28   :  { %1870 = vmatprep.subr.bf16.mxu0 %v2083_v10 }
  0x2b   :  { %1871 = vmatpush3.bf16.msra.mxu0 %v2190_v21 }
  0x2c   :  { %1884 = vmatprep.subr.bf16.mxu0 %v2083_v10 }
  0x2e   :  { %1793 = vmatmul.mubr.msk.bf16.gmra.mrb[4].mxu0 %vm222_vm3, %v50_v45 }
  0x2f   :  { %1796 = vmatprep.mubr.msk.bf16.mxu0 %vm222_vm3, %v51_v46 }
  0x36   :  { %1797 = vmatmul.mubr.msk.bf16.gmra.mrb[8].mxu0 %vm222_vm3, %v52_v51 }
  0x37   :  { %1800 = vmatprep.mubr.msk.bf16.mxu0 %vm222_vm3, %v53_v52 }
  0x3e   :  { %1801 = vmatmul.mubr.msk.bf16.gmra.mrb[12].mxu0 %vm222_vm3, %v54_v55 }
  0x3f   :  { %1872 = vmatprep.mubr.msk.bf16.mxu0 %vm2084_vm2, %v2083_v10 }
  0xe4   :  { %v438_v56 = vpop.f32.mrb[0].mxu1 }
  0xe5   :  { %v1810_v57 = vpop.f32.mrb[1].mxu1 }
  0xe6   :  { %v441_v58 = vpop.f32.mrb[2].mxu1 }
  0xe7   :  { %v1811_v59 = vpop.f32.mrb[3].mxu1 }
  0xf9   :  { %v1790_v61 = vpop.f32.mrb[0].mxu0 }
  0xfa   :  { %v2290_v62 = vadd.f32 %v1790_v61, %v1646_v60  ;;  %v281_v63 = vpop.f32.mrb[1].mxu0 }
  0xfb   :  { %v351_v0 = vadd.f32 %v1646_v60, %v281_v63  ;;  %v1791_v1 = vpop.f32.mrb[2].mxu0 }
  0xfc   :  { %v2292_v2 = vadd.f32 %v1791_v1, %v1646_v60  ;;  %v284_v3 = vpop.f32.mrb[3].mxu0 }
  0xfd   :  { %v444_v4 = vadd.f32 %v438_v56, %v351_v0  ;;  %v352_v5 = vadd.f32 %v1646_v60, %v284_v3 }
  0xff   :  { %v1649_v6 = vmul.f32 -1.442695, %v444_v4  ;;  %v470_v7 = vadd.f32 %v438_v56, %v352_v5 }
 0x101   :  { %1963 = vpow2.f32 %v1649_v6  ;;  %v1651_v8 = vmul.f32 -1.442695, %v470_v7  ;;  %v1794_v9 = vpop.f32.mrb[4].mxu0 }
 0x102   :  { %v2294_v11 = vadd.f32 %v1794_v9, %v1646_v60  ;;  %v297_v12 = vpop.f32.mrb[5].mxu0 }
 0x103   :  { %1965 = vpow2.f32 %v1651_v8  ;;  %v2296_v13 = vadd.f32 %v1646_v60, %v297_v12  ;;  %v1795_v14 = vpop.f32.mrb[6].mxu0 }
 0x104   :  { %v2298_v15 = vadd.f32 %v1795_v14, %v1646_v60  ;;  %v300_v16 = vpop.f32.mrb[7].mxu0 }
 0x105   :  { %v2300_v17 = vadd.f32 %v1646_v60, %v300_v16 }
 0x109   :  { %v1798_v19 = vpop.f32.mrb[8].mxu0 }
 0x10a   :  { %v2302_v20 = vadd.f32 %v1798_v19, %v1646_v60  ;;  %v313_v22 = vpop.f32.mrb[9].mxu0 }
 0x10b   :  { %v1964_v23 = vpop.eup %1963  ;;  %v2304_v24 = vadd.f32 %v1646_v60, %v313_v22  ;;  %v1799_v25 = vpop.f32.mrb[10].mxu0 }
 0x10c   :  { %v448_v26 = vadd.f32 1.0, %v1964_v23  ;;  %v2306_v27 = vadd.f32 %v1799_v25, %v1646_v60  ;;  %v316_v28 = vpop.f32.mrb[11].mxu0 }
 0x10d   :  { %v1966_v29 = vpop.eup %1965  ;;  %v2308_v30 = vadd.f32 %v1646_v60, %v316_v28 }
 0x10e   :  { %1967 = vrcp.f32 %v448_v26  ;;  %v474_v31 = vadd.f32 1.0, %v1966_v29 }
 0x110   :  { %1969 = vrcp.f32 %v474_v31 }
 0x111   :  { %v1802_v32 = vpop.f32.mrb[12].mxu0 }
 0x112   :  { %v2310_v33 = vadd.f32 %v1802_v32, %v1646_v60  ;;  %v329_v34 = vpop.f32.mrb[13].mxu0 }
 0x113   :  { %v2312_v35 = vadd.f32 %v1646_v60, %v329_v34  ;;  %v1803_v36 = vpop.f32.mrb[14].mxu0 }
 0x114   :  { %v2314_v37 = vadd.f32 %v1803_v36, %v1646_v60  ;;  %v332_v38 = vpop.f32.mrb[15].mxu0 }
 0x115   :  { %v2316_v39 = vadd.f32 %v1646_v60, %v332_v38 }
 0x118   :  { %v1968_v40 = vpop.eup %1967 }
 0x119   :  { %v451_v41 = vmul.f32 2.0, %v1968_v40  ;;  %v453_v50 = vmul.f32 0.0, %v1968_v40 }
 0x11a   :  { %v1970_v42 = vpop.eup %1969 }
 0x11b   :  { %v1650_v43 = vadd.f32 -1.0, %v451_v41  ;;  %v477_v44 = vmul.f32 2.0, %v1970_v42  ;;  %v479_v53 = vmul.f32 0.0, %v1970_v42 }
 0x11d   :  { %455 = vrot.lane.b32.xlu0 %v1650_v43, %s2086_s0  ;;  %v1652_v45 = vadd.f32 -1.0, %v477_v44 }
 0x121   :  { %481 = vrot.lane.b32.xlu0 %v1652_v45, %s2086_s0 }
 0x18f   :  { %v456_v46 = vpop.permute.xlu0 %455 }
 0x190   :  { %v458_v47 = vmul.f32 %v1968_v40, %v456_v46 }
 0x192   :  { %460 = vrot.lane.b32.xlu1 %v458_v47, %s2087_s5 }
 0x193   :  { %v482_v48 = vpop.permute.xlu0 %481 }
 0x194   :  { %v484_v49 = vmul.f32 %v1970_v42, %v482_v48 }
 0x196   :  { %486 = vrot.lane.b32.xlu1 %v484_v49, %s2087_s5 }
 0x204   :  { %v461_v51 = vpop.permute.xlu1 %460 }
 0x205   :  { %v2322_v52 = vadd.f32 %v461_v51, %v453_v50 }
 0x207   :  { %1971 = vtanh.f32 %v2322_v52 }
 0x208   :  { %v487_v54 = vpop.permute.xlu1 %486 }
 0x209   :  { %v2325_v55 = vadd.f32 %v487_v54, %v479_v53 }
 0x20b   :  { %1973 = vtanh.f32 %v2325_v55 }
 0x211   :  { %v1972_v56 = vpop.eup %1971 }
 0x212   :  { %466 = vrot.lane.b32.xlu0 %v1972_v56, %s2086_s0 }
 0x215   :  { %v1974_v57 = vpop.eup %1973 }
 0x216   :  { %492 = vrot.lane.b32.xlu1 %v1974_v57, %s2086_s0 }
 0x284   :  { %v467_v58 = vpop.permute.xlu0 %466 }
 0x285   :  { %v469_v59 = vmul.f32 %v1968_v40, %v467_v58 }
 0x287   :  { %v499_v60 = vpack.c.bf16 %v469_v59, %v469_v59 }
 0x288   :  { %v493_v61 = vpop.permute.xlu1 %492 }
 0x289   :  { %v495_v63 = vmul.f32 %v1970_v42, %v493_v61  ;;  %501 = vrot.lane.b32.xlu0 %v499_v60, %s2087_s5 }
 0x28b   :  { %v572_v0 = vpack.c.bf16 %v495_v63, %v495_v63 }
 0x28d   :  { %574 = vrot.lane.b32.xlu1 %v572_v0, %s2087_s5 }
 0x2fb   :  { %v502_v1 = vpop.permute.xlu0 %501 }
 0x2fc   :  { %1817 = vmatmul.mubr.msk.bf16.vlgmr.msra.gmra.mrb[4].mxu1 %vm222_vm3, %v502_v1 }
 0x2fd   :  { %1821 = vmatpush3.bf16.msra.mxu1 %v2184_v18  ;;  %1824 = vmatprep.mubr.msk.bf16.mxu1 %vm2084_vm2, %v2083_v10 }
 0x2fe   :  { %1822 = vmatprep.subr.bf16.mxu1 %v2083_v10 }
 0x2ff   :  { %v575_v3 = vpop.permute.xlu1 %574 }
 0x301   :  { %1823 = vmatpush3.bf16.msra.mxu1 %v2190_v21 }
 0x302   :  { %1828 = vmatprep.subr.bf16.mxu1 %v2083_v10 }
 0x304   :  { %1825 = vmatmul.mubr.msk.bf16.vlgmr.msra.gmra.mrb[8].mxu1 %vm222_vm3, %v575_v3 }
 0x305   :  { %1829 = vmatpush3.bf16.msra.mxu1 %v2184_v18  ;;  %1832 = vmatprep.mubr.msk.bf16.mxu1 %vm2084_vm2, %v2083_v10 }
 0x306   :  { %1830 = vmatprep.subr.bf16.mxu1 %v2083_v10 }
 0x309   :  { %1831 = vmatpush3.bf16.msra.mxu1 %v2190_v21 }
 0x30a   :  { %1836 = vmatprep.subr.bf16.mxu1 %v2083_v10 }
 0x3cf   :  { %v540_v4 = vpop.f32.mrb[4].mxu1 }
 0x3d0   :  { %v546_v5 = vadd.f32 %v540_v4, %v2290_v62  ;;  %v1818_v6 = vpop.f32.mrb[5].mxu1 }
 0x3d1   :  { %v543_v7 = vpop.f32.mrb[6].mxu1 }
 0x3d2   :  { %v1654_v8 = vmul.f32 -1.442695, %v546_v5  ;;  %v1819_v9 = vpop.f32.mrb[7].mxu1 }
 0x3d4   :  { %1975 = vpow2.f32 %v1654_v8 }
 0x3d7   :  { %v613_v12 = vpop.f32.mrb[8].mxu1 }
 0x3d8   :  { %v619_v14 = vadd.f32 %v613_v12, %v2292_v2  ;;  %v1826_v16 = vpop.f32.mrb[9].mxu1 }
 0x3d9   :  { %v616_v19 = vpop.f32.mrb[10].mxu1 }
 0x3da   :  { %v1657_v22 = vmul.f32 -1.442695, %v619_v14  ;;  %v1827_v23 = vpop.f32.mrb[11].mxu1 }
 0x3dc   :  { %1977 = vpow2.f32 %v1657_v22 }
 0x3de   :  { %v1976_v25 = vpop.eup %1975 }
 0x3df   :  { %v550_v26 = vadd.f32 1.0, %v1976_v25 }
 0x3e1   :  { %1979 = vrcp.f32 %v550_v26 }
 0x3e6   :  { %v1978_v28 = vpop.eup %1977 }
 0x3e7   :  { %v623_v29 = vadd.f32 1.0, %v1978_v28 }
 0x3e9   :  { %1981 = vrcp.f32 %v623_v29 }
 0x3eb   :  { %v1980_v62 = vpop.eup %1979 }
 0x3ec   :  { %v553_v31 = vmul.f32 2.0, %v1980_v62  ;;  %v555_v43 = vmul.f32 %v1980_v62, %v2322_v52 }
 0x3ee   :  { %v1655_v32 = vadd.f32 -1.0, %v553_v31 }
 0x3f0   :  { %557 = vrot.lane.b32.xlu0 %v1655_v32, %s2086_s0 }
 0x3f3   :  { %v1982_v34 = vpop.eup %1981 }
 0x3f4   :  { %v626_v36 = vmul.f32 2.0, %v1982_v34  ;;  %v628_v46 = vmul.f32 %v1982_v34, %v2325_v55 }
 0x3f6   :  { %v1658_v38 = vadd.f32 -1.0, %v626_v36 }
 0x3f8   :  { %630 = vrot.lane.b32.xlu1 %v1658_v38, %s2086_s0 }
 0x462   :  { %v558_v2 = vpop.permute.xlu0 %557 }
 0x463   :  { %v560_v40 = vmul.f32 %v1980_v62, %v558_v2 }
 0x465   :  { %562 = vrot.lane.b32.xlu0 %v560_v40, %s2087_s5 }
 0x46a   :  { %v631_v41 = vpop.permute.xlu1 %630 }
 0x46b   :  { %v633_v42 = vmul.f32 %v1982_v34, %v631_v41 }
 0x46d   :  { %635 = vrot.lane.b32.xlu1 %v633_v42, %s2087_s5 }
 0x4d7   :  { %v563_v44 = vpop.permute.xlu0 %562 }
 0x4d8   :  { %v2353_v45 = vadd.f32 %v563_v44, %v555_v43 }
 0x4da   :  { %1983 = vtanh.f32 %v2353_v45 }
 0x4df   :  { %v636_v47 = vpop.permute.xlu1 %635 }
 0x4e0   :  { %v2357_v48 = vadd.f32 %v636_v47, %v628_v46 }
 0x4e2   :  { %1985 = vtanh.f32 %v2357_v48 }
 0x4e4   :  { %v1984_v49 = vpop.eup %1983 }
 0x4e5   :  { %568 = vrot.lane.b32.xlu0 %v1984_v49, %s2086_s0 }
 0x4ec   :  { %v1986_v50 = vpop.eup %1985 }
 0x4ed   :  { %641 = vrot.lane.b32.xlu1 %v1986_v50, %s2086_s0 }
 0x557   :  { %v569_v51 = vpop.permute.xlu0 %568 }
 0x558   :  { %v571_v52 = vmul.f32 %v1980_v62, %v569_v51 }
 0x55a   :  { %v648_v53 = vpack.c.bf16 %v571_v52, %v571_v52 }
 0x55c   :  { %650 = vrot.lane.b32.xlu0 %v648_v53, %s2087_s5 }
 0x55f   :  { %v642_v54 = vpop.permute.xlu1 %641 }
 0x560   :  { %v644_v56 = vmul.f32 %v1982_v34, %v642_v54 }
 0x562   :  { %v721_v57 = vpack.c.bf16 %v644_v56, %v644_v56 }
 0x564   :  { %723 = vrot.lane.b32.xlu1 %v721_v57, %s2087_s5 }
 0x5ce   :  { %v651_v55 = vpop.permute.xlu0 %650 }
 0x5cf   :  { %1833 = vmatmul.mubr.msk.bf16.vlgmr.msra.gmra.mrb[12].mxu1 %vm222_vm3, %v651_v55 }
 0x5d0   :  { %1837 = vmatpush3.bf16.msra.mxu1 %v2184_v18  ;;  %1840 = vmatprep.mubr.msk.bf16.mxu1 %vm2084_vm2, %v2083_v10 }
 0x5d1   :  { %1838 = vmatprep.subr.bf16.mxu1 %v2083_v10 }
 0x5d4   :  { %1839 = vmatpush3.bf16.msra.mxu1 %v2190_v21 }
 0x5d5   :  { %1844 = vmatprep.subr.bf16.mxu1 %v2083_v10 }
 0x5d6   :  { %v724_v58 = vpop.permute.xlu1 %723 }
 0x5d7   :  { %1841 = vmatmul.mubr.msk.bf16.vlgmr.msra.gmra.mrb[16].mxu1 %vm222_vm3, %v724_v58 }
 0x5d8   :  { %1845 = vmatpush3.bf16.msra.mxu1 %v2184_v18  ;;  %1848 = vmatprep.mubr.msk.bf16.mxu1 %vm2084_vm2, %v2083_v10 }
 0x5d9   :  { %1846 = vmatprep.subr.bf16.mxu1 %v2083_v10 }
 0x5dc   :  { %1847 = vmatpush3.bf16.msra.mxu1 %v2190_v21 }
 0x5dd   :  { %1852 = vmatprep.subr.bf16.mxu1 %v2083_v10 }
 0x6a2   :  { %v689_v59 = vpop.f32.mrb[12].mxu1 }
 0x6a3   :  { %v695_v60 = vadd.f32 %v689_v59, %v2296_v13  ;;  %v1834_v61 = vpop.f32.mrb[13].mxu1 }
 0x6a4   :  { %v692_v63 = vpop.f32.mrb[14].mxu1 }
 0x6a5   :  { %v1660_v0 = vmul.f32 -1.442695, %v695_v60  ;;  %v1835_v1 = vpop.f32.mrb[15].mxu1 }
 0x6a7   :  { %1987 = vpow2.f32 %v1660_v0 }
 0x6aa   :  { %v762_v3 = vpop.f32.mrb[16].mxu1 }
 0x6ab   :  { %v768_v4 = vadd.f32 %v762_v3, %v2300_v17  ;;  %v1842_v5 = vpop.f32.mrb[17].mxu1 }
 0x6ac   :  { %v765_v6 = vpop.f32.mrb[18].mxu1 }
 0x6ad   :  { %v1663_v7 = vmul.f32 -1.442695, %v768_v4  ;;  %v1843_v8 = vpop.f32.mrb[19].mxu1 }
 0x6af   :  { %1989 = vpow2.f32 %v1663_v7 }
 0x6b1   :  { %v1988_v9 = vpop.eup %1987 }
 0x6b2   :  { %v699_v12 = vadd.f32 1.0, %v1988_v9 }
 0x6b4   :  { %1991 = vrcp.f32 %v699_v12 }
 0x6b9   :  { %v1990_v14 = vpop.eup %1989 }
 0x6ba   :  { %v772_v16 = vadd.f32 1.0, %v1990_v14 }
 0x6bc   :  { %1993 = vrcp.f32 %v772_v16 }
 0x6be   :  { %v1992_v13 = vpop.eup %1991 }
 0x6bf   :  { %v702_v19 = vmul.f32 2.0, %v1992_v13  ;;  %v704_v31 = vmul.f32 %v1992_v13, %v2353_v45 }
 0x6c1   :  { %v1661_v22 = vadd.f32 -1.0, %v702_v19 }
 0x6c3   :  { %706 = vrot.lane.b32.xlu0 %v1661_v22, %s2086_s0 }
 0x6c6   :  { %v1994_v23 = vpop.eup %1993 }
 0x6c7   :  { %v775_v25 = vmul.f32 2.0, %v1994_v23  ;;  %v777_v36 = vmul.f32 %v1994_v23, %v2357_v48 }
 0x6c9   :  { %v1664_v26 = vadd.f32 -1.0, %v775_v25 }
 0x6cb   :  { %779 = vrot.lane.b32.xlu1 %v1664_v26, %s2086_s0 }
 0x735   :  { %v707_v17 = vpop.permute.xlu0 %706 }
 0x736   :  { %v709_v28 = vmul.f32 %v1992_v13, %v707_v17 }
 0x738   :  { %711 = vrot.lane.b32.xlu0 %v709_v28, %s2087_s5 }
 0x73d   :  { %v780_v29 = vpop.permute.xlu1 %779 }
 0x73e   :  { %v782_v62 = vmul.f32 %v1994_v23, %v780_v29 }
 0x740   :  { %784 = vrot.lane.b32.xlu1 %v782_v62, %s2087_s5 }
 0x7aa   :  { %v712_v32 = vpop.permute.xlu0 %711 }
 0x7ab   :  { %v2385_v34 = vadd.f32 %v712_v32, %v704_v31 }
 0x7ad   :  { %1995 = vtanh.f32 %v2385_v34 }
 0x7b2   :  { %v785_v38 = vpop.permute.xlu1 %784 }
 0x7b3   :  { %v2389_v2 = vadd.f32 %v785_v38, %v777_v36 }
 0x7b5   :  { %1997 = vtanh.f32 %v2389_v2 }
 0x7b7   :  { %v1996_v40 = vpop.eup %1995 }
 0x7b8   :  { %717 = vrot.lane.b32.xlu0 %v1996_v40, %s2086_s0 }
 0x7bf   :  { %v1998_v41 = vpop.eup %1997 }
 0x7c0   :  { %790 = vrot.lane.b32.xlu1 %v1998_v41, %s2086_s0 }
 0x82a   :  { %v718_v42 = vpop.permute.xlu0 %717 }
 0x82b   :  { %v720_v43 = vmul.f32 %v1992_v13, %v718_v42 }
 0x82d   :  { %v797_v44 = vpack.c.bf16 %v720_v43, %v720_v43 }
 0x82f   :  { %799 = vrot.lane.b32.xlu0 %v797_v44, %s2087_s5 }
 0x832   :  { %v791_v45 = vpop.permute.xlu1 %790 }
 0x833   :  { %v793_v46 = vmul.f32 %v1994_v23, %v791_v45 }
 0x835   :  { %v870_v47 = vpack.c.bf16 %v793_v46, %v793_v46 }
 0x837   :  { %872 = vrot.lane.b32.xlu1 %v870_v47, %s2087_s5 }
 0x8a1   :  { %v800_v48 = vpop.permute.xlu0 %799 }
 0x8a2   :  { %1849 = vmatmul.mubr.msk.bf16.vlgmr.msra.gmra.mrb[20].mxu1 %vm222_vm3, %v800_v48 }
 0x8a3   :  { %1853 = vmatpush3.bf16.msra.mxu1 %v2184_v18  ;;  %1856 = vmatprep.mubr.msk.bf16.mxu1 %vm2084_vm2, %v2083_v10 }
 0x8a4   :  { %1854 = vmatprep.subr.bf16.mxu1 %v2083_v10 }
 0x8a7   :  { %1855 = vmatpush3.bf16.msra.mxu1 %v2190_v21 }
 0x8a8   :  { %1860 = vmatprep.subr.bf16.mxu1 %v2083_v10 }
 0x8a9   :  { %v873_v49 = vpop.permute.xlu1 %872 }
 0x8aa   :  { %1857 = vmatmul.mubr.msk.bf16.vlgmr.msra.gmra.mrb[24].mxu1 %vm222_vm3, %v873_v49 }
 0x8ab   :  { %1861 = vmatpush3.bf16.msra.mxu1 %v2184_v18  ;;  %1864 = vmatprep.mubr.msk.bf16.mxu1 %vm2084_vm2, %v2083_v10 }
 0x8ac   :  { %1862 = vmatprep.subr.bf16.mxu1 %v2083_v10 }
 0x8af   :  { %1863 = vmatpush3.bf16.msra.mxu1 %v2190_v21 }
 0x8b0   :  { %1876 = vmatprep.subr.bf16.mxu1 %v2083_v10 }
 0x975   :  { %v838_v50 = vpop.f32.mrb[20].mxu1 }
 0x976   :  { %v844_v51 = vadd.f32 %v838_v50, %v2294_v11  ;;  %v1850_v52 = vpop.f32.mrb[21].mxu1 }
 0x977   :  { %v841_v53 = vpop.f32.mrb[22].mxu1 }
 0x978   :  { %v1666_v54 = vmul.f32 -1.442695, %v844_v51  ;;  %v1851_v56 = vpop.f32.mrb[23].mxu1 }
 0x97a   :  { %1999 = vpow2.f32 %v1666_v54 }
 0x97d   :  { %v911_v57 = vpop.f32.mrb[24].mxu1 }
 0x97e   :  { %v917_v55 = vadd.f32 %v911_v57, %v2298_v15  ;;  %v1858_v58 = vpop.f32.mrb[25].mxu1 }
 0x97f   :  { %v914_v59 = vpop.f32.mrb[26].mxu1 }
 0x980   :  { %v1669_v60 = vmul.f32 -1.442695, %v917_v55  ;;  %v1859_v61 = vpop.f32.mrb[27].mxu1 }
 0x982   :  { %2001 = vpow2.f32 %v1669_v60 }
 0x984   :  { %v2000_v63 = vpop.eup %1999 }
 0x985   :  { %v848_v0 = vadd.f32 1.0, %v2000_v63 }
 0x987   :  { %2003 = vrcp.f32 %v848_v0 }
 0x98c   :  { %v2002_v1 = vpop.eup %2001 }
 0x98d   :  { %v921_v3 = vadd.f32 1.0, %v2002_v1 }
 0x98f   :  { %2005 = vrcp.f32 %v921_v3 }
 0x991   :  { %v2004_v11 = vpop.eup %2003 }
 0x992   :  { %v851_v4 = vmul.f32 2.0, %v2004_v11  ;;  %v853_v16 = vmul.f32 %v2004_v11, %v2385_v34 }
 0x994   :  { %v1667_v5 = vadd.f32 -1.0, %v851_v4 }
 0x996   :  { %855 = vrot.lane.b32.xlu0 %v1667_v5, %s2086_s0 }
 0x999   :  { %v2006_v6 = vpop.eup %2005 }
 0x99a   :  { %v924_v7 = vmul.f32 2.0, %v2006_v6  ;;  %v926_v22 = vmul.f32 %v2006_v6, %v2389_v2 }
 0x99c   :  { %v1670_v8 = vadd.f32 -1.0, %v924_v7 }
 0x99e   :  { %928 = vrot.lane.b32.xlu1 %v1670_v8, %s2086_s0 }
 0xa08   :  { %v856_v15 = vpop.permute.xlu0 %855 }
 0xa09   :  { %v858_v9 = vmul.f32 %v2004_v11, %v856_v15 }
 0xa0b   :  { %860 = vrot.lane.b32.xlu0 %v858_v9, %s2087_s5 }
 0xa10   :  { %v929_v12 = vpop.permute.xlu1 %928 }
 0xa11   :  { %v931_v14 = vmul.f32 %v2006_v6, %v929_v12 }
 0xa13   :  { %933 = vrot.lane.b32.xlu1 %v931_v14, %s2087_s5 }
 0xa7d   :  { %v861_v13 = vpop.permute.xlu0 %860 }
 0xa7e   :  { %v2417_v19 = vadd.f32 %v861_v13, %v853_v16 }
 0xa80   :  { %2007 = vtanh.f32 %v2417_v19 }
 0xa85   :  { %v934_v23 = vpop.permute.xlu1 %933 }
 0xa86   :  { %v2421_v25 = vadd.f32 %v934_v23, %v926_v22 }
 0xa88   :  { %2009 = vtanh.f32 %v2421_v25 }
 0xa8a   :  { %v2008_v26 = vpop.eup %2007 }
 0xa8b   :  { %866 = vrot.lane.b32.xlu0 %v2008_v26, %s2086_s0 }
 0xa92   :  { %v2010_v17 = vpop.eup %2009 }
 0xa93   :  { %939 = vrot.lane.b32.xlu1 %v2010_v17, %s2086_s0 }
 0xafd   :  { %v867_v28 = vpop.permute.xlu0 %866 }
 0xafe   :  { %v869_v29 = vmul.f32 %v2004_v11, %v867_v28 }
 0xb00   :  { %v946_v62 = vpack.c.bf16 %v869_v29, %v869_v29 }
 0xb02   :  { %948 = vrot.lane.b32.xlu0 %v946_v62, %s2087_s5 }
 0xb05   :  { %v940_v31 = vpop.permute.xlu1 %939 }
 0xb06   :  { %v942_v32 = vmul.f32 %v2006_v6, %v940_v31 }
 0xb08   :  { %v1019_v34 = vpack.c.bf16 %v942_v32, %v942_v32 }
 0xb0a   :  { %1021 = vrot.lane.b32.xlu1 %v1019_v34, %s2087_s5 }
 0xb74   :  { %v949_v36 = vpop.permute.xlu0 %948 }
 0xb75   :  { %1865 = vmatmul.mubr.msk.bf16.vlgmr.msra.gmra.mrb[28].mxu1 %vm222_vm3, %v949_v36 }
 0xb76   :  { %1877 = vmatpush3.bf16.msra.mxu1 %v2184_v18  ;;  %1880 = vmatprep.mubr.msk.bf16.mxu1 %vm2084_vm2, %v2083_v10 }
 0xb77   :  { %1878 = vmatprep.subr.bf16.mxu1 %v2083_v10 }
 0xb7a   :  { %1879 = vmatpush3.bf16.msra.mxu1 %v2190_v21 }
 0xb7b   :  { %1892 = vmatprep.subr.bf16.mxu1 %v2083_v10 }
 0xb7c   :  { %v1022_v38 = vpop.permute.xlu1 %1021 }
 0xb7d   :  { %1873 = vmatmul.mubr.msk.bf16.vlgmr.msra.gmra.mrb[16].mxu0 %vm222_vm3, %v1022_v38 }
 0xb7e   :  { %1885 = vmatpush3.bf16.msra.mxu0 %v2184_v18  ;;  %1888 = vmatprep.mubr.msk.bf16.mxu0 %vm2084_vm2, %v2083_v10 }
 0xb7f   :  { %1886 = vmatprep.subr.bf16.mxu0 %v2083_v10 }
 0xb82   :  { %1887 = vmatpush3.bf16.msra.mxu0 %v2190_v21 }
 0xb83   :  { %1900 = vmatprep.subr.bf16.mxu0 %v2083_v10 }
 0xc48   :  { %v987_v2 = vpop.f32.mrb[28].mxu1 }
 0xc49   :  { %v993_v40 = vadd.f32 %v987_v2, %v2304_v24  ;;  %v1866_v41 = vpop.f32.mrb[29].mxu1 }
 0xc4a   :  { %v990_v42 = vpop.f32.mrb[30].mxu1 }
 0xc4b   :  { %v1672_v43 = vmul.f32 -1.442695, %v993_v40  ;;  %v1867_v44 = vpop.f32.mrb[31].mxu1 }
 0xc4d   :  { %2011 = vpow2.f32 %v1672_v43 }
 0xc50   :  { %v1060_v45 = vpop.f32.mrb[16].mxu0 }
 0xc51   :  { %v1066_v46 = vadd.f32 %v1060_v45, %v2308_v30  ;;  %v1874_v47 = vpop.f32.mrb[17].mxu0 }
 0xc52   :  { %v1063_v48 = vpop.f32.mrb[18].mxu0 }
 0xc53   :  { %v1675_v49 = vmul.f32 -1.442695, %v1066_v46  ;;  %v1875_v50 = vpop.f32.mrb[19].mxu0 }
 0xc55   :  { %2013 = vpow2.f32 %v1675_v49 }
 0xc57   :  { %v2012_v51 = vpop.eup %2011 }
 0xc58   :  { %v997_v52 = vadd.f32 1.0, %v2012_v51 }
 0xc5a   :  { %2015 = vrcp.f32 %v997_v52 }
 0xc5f   :  { %v2014_v53 = vpop.eup %2013 }
 0xc60   :  { %v1070_v54 = vadd.f32 1.0, %v2014_v53 }
 0xc62   :  { %2017 = vrcp.f32 %v1070_v54 }
 0xc64   :  { %v2016_v24 = vpop.eup %2015 }
 0xc65   :  { %v1000_v56 = vmul.f32 2.0, %v2016_v24  ;;  %v1002_v0 = vmul.f32 %v2016_v24, %v2417_v19 }
 0xc67   :  { %v1673_v57 = vadd.f32 -1.0, %v1000_v56 }
 0xc69   :  { %1004 = vrot.lane.b32.xlu0 %v1673_v57, %s2086_s0 }
 0xc6c   :  { %v2018_v55 = vpop.eup %2017 }
 0xc6d   :  { %v1073_v58 = vmul.f32 2.0, %v2018_v55  ;;  %v1075_v11 = vmul.f32 %v2018_v55, %v2421_v25 }
 0xc6f   :  { %v1676_v59 = vadd.f32 -1.0, %v1073_v58 }
 0xc71   :  { %1077 = vrot.lane.b32.xlu1 %v1676_v59, %s2086_s0 }
 0xcdb   :  { %v1005_v30 = vpop.permute.xlu0 %1004 }
 0xcdc   :  { %v1007_v60 = vmul.f32 %v2016_v24, %v1005_v30 }
 0xcde   :  { %1009 = vrot.lane.b32.xlu0 %v1007_v60, %s2087_s5 }
 0xce3   :  { %v1078_v61 = vpop.permute.xlu1 %1077 }
 0xce4   :  { %v1080_v63 = vmul.f32 %v2018_v55, %v1078_v61 }
 0xce6   :  { %1082 = vrot.lane.b32.xlu1 %v1080_v63, %s2087_s5 }
 0xd50   :  { %v1010_v1 = vpop.permute.xlu0 %1009 }
 0xd51   :  { %v2449_v3 = vadd.f32 %v1010_v1, %v1002_v0 }
 0xd53   :  { %2019 = vtanh.f32 %v2449_v3 }
 0xd58   :  { %v1083_v4 = vpop.permute.xlu1 %1082 }
 0xd59   :  { %v2453_v5 = vadd.f32 %v1083_v4, %v1075_v11 }
 0xd5b   :  { %2021 = vtanh.f32 %v2453_v5 }
 0xd5d   :  { %v2020_v6 = vpop.eup %2019 }
 0xd5e   :  { %1015 = vrot.lane.b32.xlu0 %v2020_v6, %s2086_s0 }
 0xd65   :  { %v2022_v7 = vpop.eup %2021 }
 0xd66   :  { %1088 = vrot.lane.b32.xlu1 %v2022_v7, %s2086_s0 }
 0xdd0   :  { %v1016_v8 = vpop.permute.xlu0 %1015 }
 0xdd1   :  { %v1018_v15 = vmul.f32 %v2016_v24, %v1016_v8 }
 0xdd3   :  { %v1095_v9 = vpack.c.bf16 %v1018_v15, %v1018_v15 }
 0xdd5   :  { %1097 = vrot.lane.b32.xlu0 %v1095_v9, %s2087_s5 }
 0xdd8   :  { %v1089_v12 = vpop.permute.xlu1 %1088 }
 0xdd9   :  { %v1091_v14 = vmul.f32 %v2018_v55, %v1089_v12 }
 0xddb   :  { %v1168_v16 = vpack.c.bf16 %v1091_v14, %v1091_v14 }
 0xddd   :  { %1170 = vrot.lane.b32.xlu1 %v1168_v16, %s2087_s5 }
 0xe47   :  { %v1098_v13 = vpop.permute.xlu0 %1097 }
 0xe48   :  { %1881 = vmatmul.mubr.msk.bf16.vlgmr.msra.gmra.mrb[32].mxu1 %vm222_vm3, %v1098_v13 }
 0xe49   :  { %1893 = vmatpush3.bf16.msra.mxu1 %v2184_v18  ;;  %1896 = vmatprep.mubr.msk.bf16.mxu1 %vm2084_vm2, %v2083_v10 }
 0xe4a   :  { %1894 = vmatprep.subr.bf16.mxu1 %v2083_v10 }
 0xe4d   :  { %1895 = vmatpush3.bf16.msra.mxu1 %v2190_v21 }
 0xe4e   :  { %1908 = vmatprep.subr.bf16.mxu1 %v2083_v10 }
 0xe4f   :  { %v1171_v19 = vpop.permute.xlu1 %1170 }
 0xe50   :  { %1889 = vmatmul.mubr.msk.bf16.vlgmr.msra.gmra.mrb[20].mxu0 %vm222_vm3, %v1171_v19 }
 0xe51   :  { %1901 = vmatpush3.bf16.msra.mxu0 %v2184_v18  ;;  %1904 = vmatprep.mubr.msk.bf16.mxu0 %vm2084_vm2, %v2083_v10 }
 0xe52   :  { %1902 = vmatprep.subr.bf16.mxu0 %v2083_v10 }
 0xe55   :  { %1903 = vmatpush3.bf16.msra.mxu0 %v2190_v21 }
 0xe56   :  { %1916 = vmatprep.subr.bf16.mxu0 %v2083_v10 }
 0xf1b   :  { %v1136_v22 = vpop.f32.mrb[32].mxu1 }
 0xf1c   :  { %v1142_v23 = vadd.f32 %v1136_v22, %v2302_v20  ;;  %v1882_v25 = vpop.f32.mrb[33].mxu1 }
 0xf1d   :  { %v1139_v26 = vpop.f32.mrb[34].mxu1 }
 0xf1e   :  { %v1678_v17 = vmul.f32 -1.442695, %v1142_v23  ;;  %v1883_v28 = vpop.f32.mrb[35].mxu1 }
 0xf20   :  { %2023 = vpow2.f32 %v1678_v17 }
 0xf23   :  { %v1209_v29 = vpop.f32.mrb[20].mxu0 }
 0xf24   :  { %v1215_v62 = vadd.f32 %v1209_v29, %v2306_v27  ;;  %v1890_v31 = vpop.f32.mrb[21].mxu0 }
 0xf25   :  { %v1212_v32 = vpop.f32.mrb[22].mxu0 }
 0xf26   :  { %v1681_v34 = vmul.f32 -1.442695, %v1215_v62  ;;  %v1891_v36 = vpop.f32.mrb[23].mxu0 }
 0xf28   :  { %2025 = vpow2.f32 %v1681_v34 }
 0xf2a   :  { %v2024_v38 = vpop.eup %2023 }
 0xf2b   :  { %v1146_v2 = vadd.f32 1.0, %v2024_v38 }
 0xf2d   :  { %2027 = vrcp.f32 %v1146_v2 }
 0xf32   :  { %v2026_v40 = vpop.eup %2025 }
 0xf33   :  { %v1219_v41 = vadd.f32 1.0, %v2026_v40 }
 0xf35   :  { %2029 = vrcp.f32 %v1219_v41 }
 0xf37   :  { %v2028_v20 = vpop.eup %2027 }
 0xf38   :  { %v1149_v42 = vmul.f32 2.0, %v2028_v20  ;;  %v1151_v50 = vmul.f32 %v2028_v20, %v2449_v3 }
 0xf3a   :  { %v1679_v43 = vadd.f32 -1.0, %v1149_v42 }
 0xf3c   :  { %1153 = vrot.lane.b32.xlu0 %v1679_v43, %s2086_s0 }
 0xf3f   :  { %v2030_v44 = vpop.eup %2029 }
 0xf40   :  { %v1222_v45 = vmul.f32 2.0, %v2030_v44  ;;  %v1224_v53 = vmul.f32 %v2030_v44, %v2453_v5 }
 0xf42   :  { %v1682_v46 = vadd.f32 -1.0, %v1222_v45 }
 0xf44   :  { %1226 = vrot.lane.b32.xlu1 %v1682_v46, %s2086_s0 }
 0xfae   :  { %v1154_v27 = vpop.permute.xlu0 %1153 }
 0xfaf   :  { %v1156_v47 = vmul.f32 %v2028_v20, %v1154_v27 }
 0xfb1   :  { %1158 = vrot.lane.b32.xlu0 %v1156_v47, %s2087_s5 }
 0xfb6   :  { %v1227_v48 = vpop.permute.xlu1 %1226 }
 0xfb7   :  { %v1229_v49 = vmul.f32 %v2030_v44, %v1227_v48 }
 0xfb9   :  { %1231 = vrot.lane.b32.xlu1 %v1229_v49, %s2087_s5 }
0x1023   :  { %v1159_v51 = vpop.permute.xlu0 %1158 }
0x1024   :  { %v2481_v52 = vadd.f32 %v1159_v51, %v1151_v50 }
0x1026   :  { %2031 = vtanh.f32 %v2481_v52 }
0x102b   :  { %v1232_v54 = vpop.permute.xlu1 %1231 }
0x102c   :  { %v2485_v24 = vadd.f32 %v1232_v54, %v1224_v53 }
0x102e   :  { %2033 = vtanh.f32 %v2485_v24 }
0x1030   :  { %v2032_v56 = vpop.eup %2031 }
0x1031   :  { %1164 = vrot.lane.b32.xlu0 %v2032_v56, %s2086_s0 }
0x1038   :  { %v2034_v57 = vpop.eup %2033 }
0x1039   :  { %1237 = vrot.lane.b32.xlu1 %v2034_v57, %s2086_s0 }
0x10a3   :  { %v1165_v55 = vpop.permute.xlu0 %1164 }
0x10a4   :  { %v1167_v58 = vmul.f32 %v2028_v20, %v1165_v55 }
0x10a6   :  { %v1244_v59 = vpack.c.bf16 %v1167_v58, %v1167_v58 }
0x10a8   :  { %1246 = vrot.lane.b32.xlu0 %v1244_v59, %s2087_s5 }
0x10ab   :  { %v1238_v30 = vpop.permute.xlu1 %1237 }
0x10ac   :  { %v1240_v60 = vmul.f32 %v2030_v44, %v1238_v30 }
0x10ae   :  { %v1317_v61 = vpack.c.bf16 %v1240_v60, %v1240_v60 }
0x10b0   :  { %1319 = vrot.lane.b32.xlu1 %v1317_v61, %s2087_s5 }
0x111a   :  { %v1247_v63 = vpop.permute.xlu0 %1246 }
0x111b   :  { %1897 = vmatmul.mubr.msk.bf16.vlgmr.msra.gmra.mrb[36].mxu1 %vm222_vm3, %v1247_v63 }
0x111c   :  { %1909 = vmatpush3.bf16.msra.mxu1 %v2184_v18  ;;  %1912 = vmatprep.mubr.msk.bf16.mxu1 %vm2084_vm2, %v2083_v10 }
0x111d   :  { %1910 = vmatprep.subr.bf16.mxu1 %v2083_v10 }
0x1120   :  { %1911 = vmatpush3.bf16.msra.mxu1 %v2190_v21 }
0x1121   :  { %1924 = vmatprep.subr.bf16.mxu1 %v2083_v10 }
0x1122   :  { %v1320_v0 = vpop.permute.xlu1 %1319 }
0x1123   :  { %1905 = vmatmul.mubr.msk.bf16.vlgmr.msra.gmra.mrb[24].mxu0 %vm222_vm3, %v1320_v0 }
0x1124   :  { %1917 = vmatpush3.bf16.msra.mxu0 %v2184_v18  ;;  %1920 = vmatprep.mubr.msk.bf16.mxu0 %vm2084_vm2, %v2083_v10 }
0x1125   :  { %1918 = vmatprep.subr.bf16.mxu0 %v2083_v10 }
0x1128   :  { %1919 = vmatpush3.bf16.msra.mxu0 %v2190_v21 }
0x11ee   :  { %v1285_v1 = vpop.f32.mrb[36].mxu1 }
0x11ef   :  { %v1291_v3 = vadd.f32 %v1285_v1, %v2312_v35  ;;  %v1898_v11 = vpop.f32.mrb[37].mxu1 }
0x11f0   :  { %v1288_v4 = vpop.f32.mrb[38].mxu1 }
0x11f1   :  { %v1684_v5 = vmul.f32 -1.442695, %v1291_v3  ;;  %v1899_v6 = vpop.f32.mrb[39].mxu1 }
0x11f3   :  { %2035 = vpow2.f32 %v1684_v5 }
0x11f6   :  { %v1358_v7 = vpop.f32.mrb[24].mxu0 }
0x11f7   :  { %v1364_v8 = vadd.f32 %v1358_v7, %v2316_v39  ;;  %v1906_v15 = vpop.f32.mrb[25].mxu0 }
0x11f8   :  { %v1361_v18 = vpop.f32.mrb[26].mxu0 }
0x11f9   :  { %v1687_v9 = vmul.f32 -1.442695, %v1364_v8  ;;  %v1907_v12 = vpop.f32.mrb[27].mxu0 }
0x11fb   :  { %2037 = vpow2.f32 %v1687_v9 }
0x11fd   :  { %v2036_v14 = vpop.eup %2035 }
0x11fe   :  { %v1295_v16 = vadd.f32 1.0, %v2036_v14  ;;  %v1961_v14 = vld [vmem:[%s2559_s6] sm:$0xff]  }
0x1200   :  { %2039 = vrcp.f32 %v1295_v16  ;;  %v1962_v16 = vld [vmem:[%s2559_s6 + $0x8] sm:$0xff]   ;;  %s2088_s6 = smov [#allocation3]  }
0x1201   :  { %s1617_s11 = sshll.u32 %s2088_s6, 4  ;;  %s1618_s11 = int_to_ptr.vmem [resolvable:$true] %s1617_s11 }
0x1202   :  { %s2059_s12 = scalar_lea.vmem %s1618_s11, 256  ;;  %p2064_p1 = scmp.lt.s32.totalorder %s1618_s11, %s1618_s11 }
0x1203   :  { %p2060_p0 = scmp.ne.s32.totalorder %s1618_s11, %s2059_s12  ;;  %p2065_p2 = scmp.lt.s32.totalorder %s2059_s12, %s2059_s12 }
0x1205   :  { %v2038_v21 = vpop.eup %2037  ;;  %p2066_p3 = por %p2065_p2, %p2064_p1 }
0x1206   :  { %v1368_v13 = vadd.f32 1.0, %v2038_v21 }
0x1207   :  { %p2067_p4 = pnand %p2066_p3, %p2060_p0 }
0x1208   :  { %2041 = vrcp.f32 %v1368_v13 }
0x120a   :  { %v2040_v35 = vpop.eup %2039 }
0x120b   :  { %v1298_v19 = vmul.f32 2.0, %v2040_v35  ;;  %v1300_v62 = vmul.f32 %v2040_v35, %v2481_v52 }
0x120d   :  { %v1685_v22 = vadd.f32 -1.0, %v1298_v19 }
0x120f   :  { %1302 = vrot.lane.b32.xlu0 %v1685_v22, %s2086_s0 }
0x1212   :  { %v2042_v23 = vpop.eup %2041 }
0x1213   :  { %v1371_v25 = vmul.f32 2.0, %v2042_v23  ;;  %v1373_v34 = vmul.f32 %v2042_v23, %v2485_v24 }
0x1215   :  { %v1688_v26 = vadd.f32 -1.0, %v1371_v25 }
0x1217   :  { %1375 = vrot.lane.b32.xlu1 %v1688_v26, %s2086_s0  ;;  %v1695_v26 = vld [vmem:[%s2560_s7] ss:$0 sm:$0xff] }
0x1281   :  { %v1303_v39 = vpop.permute.xlu0 %1302 }
0x1282   :  { %v1305_v17 = vmul.f32 %v2040_v35, %v1303_v39 }
0x1284   :  { %1307 = vrot.lane.b32.xlu0 %v1305_v17, %s2087_s5 }
0x1289   :  { %v1376_v28 = vpop.permute.xlu1 %1375 }
0x128a   :  { %v1378_v29 = vmul.f32 %v2042_v23, %v1376_v28 }
0x128c   :  { %1380 = vrot.lane.b32.xlu1 %v1378_v29, %s2087_s5 }
0x12f6   :  { %v1308_v31 = vpop.permute.xlu0 %1307 }
0x12f7   :  { %v1310_v32 = vadd.f32 %v1308_v31, %v1300_v62 }
0x12f9   :  { %2043 = vtanh.f32 %v1310_v32 }
0x12fe   :  { %v1381_v36 = vpop.permute.xlu1 %1380 }
0x12ff   :  { %v1383_v38 = vadd.f32 %v1381_v36, %v1373_v34 }
0x1301   :  { %2045 = vtanh.f32 %v1383_v38 }
0x1303   :  { %v2044_v2 = vpop.eup %2043 }
0x1304   :  { %1313 = vrot.lane.b32.xlu0 %v2044_v2, %s2086_s0 }
0x130b   :  { %v2046_v40 = vpop.eup %2045 }
0x130c   :  { %1386 = vrot.lane.b32.xlu1 %v2046_v40, %s2086_s0 }
0x1376   :  { %v1314_v41 = vpop.permute.xlu0 %1313 }
0x1377   :  { %v1316_v20 = vmul.f32 %v2040_v35, %v1314_v41 }
0x1379   :  { %v1393_v42 = vpack.c.bf16 %v1316_v20, %v1316_v20 }
0x137b   :  { %1395 = vrot.lane.b32.xlu0 %v1393_v42, %s2087_s5 }
0x137e   :  { %v1387_v43 = vpop.permute.xlu1 %1386 }
0x137f   :  { %v1389_v44 = vmul.f32 %v2042_v23, %v1387_v43 }
0x1381   :  { %v1466_v45 = vpack.c.bf16 %v1389_v44, %v1389_v44 }
0x1383   :  { %1468 = vrot.lane.b32.xlu1 %v1466_v45, %s2087_s5 }
0x13ed   :  { %v1396_v46 = vpop.permute.xlu0 %1395 }
0x13ee   :  { %1913 = vmatmul.mubr.msk.bf16.vlgmr.msra.gmra.mrb[40].mxu1 %vm222_vm3, %v1396_v46 }
0x13ef   :  { %1928 = vmatprep.mubr.msk.bf16.mxu1 %vm2084_vm2, %v2083_v10  ;;  %1925 = vmatpush3.bf16.msra.mxu1 %v1961_v14 }
0x13f0   :  { %1926 = vmatprep.subr.bf16.mxu1 %v2083_v10 }
0x13f3   :  { %1927 = vmatpush3.bf16.msra.mxu1 %v1962_v16 }
0x13f5   :  { %v1469_v27 = vpop.permute.xlu1 %1468 }
0x13f6   :  { %1921 = vmatmul.mubr.msk.bf16.vlgmr.msra.gmra.mrb[28].mxu0 %vm222_vm3, %v1469_v27 }
0x14c1   :  { %v1434_v47 = vpop.f32.mrb[40].mxu1 }
0x14c2   :  { %v1440_v48 = vadd.f32 %v1434_v47, %v2310_v33  ;;  %v1914_v49 = vpop.f32.mrb[41].mxu1 }
0x14c3   :  { %v1437_v50 = vpop.f32.mrb[42].mxu1 }
0x14c4   :  { %v1690_v51 = vmul.f32 -1.442695, %v1440_v48  ;;  %v1915_v52 = vpop.f32.mrb[43].mxu1 }
0x14c6   :  { %2047 = vpow2.f32 %v1690_v51 }
0x14c9   :  { %v1507_v53 = vpop.f32.mrb[28].mxu0 }
0x14ca   :  { %v1513_v54 = vadd.f32 %v1507_v53, %v2314_v37  ;;  %v1922_v24 = vpop.f32.mrb[29].mxu0 }
0x14cb   :  { %v1510_v56 = vpop.f32.mrb[30].mxu0 }
0x14cc   :  { %v1693_v57 = vmul.f32 -1.442695, %v1513_v54  ;;  %v1923_v55 = vpop.f32.mrb[31].mxu0 }
0x14ce   :  { %2049 = vpow2.f32 %v1693_v57 }
0x14d0   :  { %v2048_v58 = vpop.eup %2047 }
0x14d1   :  { %v1444_v59 = vadd.f32 1.0, %v2048_v58 }
0x14d3   :  { %2051 = vrcp.f32 %v1444_v59 }
0x14d8   :  { %v2050_v30 = vpop.eup %2049 }
0x14d9   :  { %v1517_v60 = vadd.f32 1.0, %v2050_v30 }
0x14db   :  { %2053 = vrcp.f32 %v1517_v60 }
0x14dd   :  { %v2052_v33 = vpop.eup %2051 }
0x14de   :  { %v1447_v61 = vmul.f32 2.0, %v2052_v33  ;;  %v1449_v6 = vmul.f32 %v2052_v33, %v1310_v32 }
0x14e0   :  { %v1691_v63 = vadd.f32 -1.0, %v1447_v61 }
0x14e2   :  { %1451 = vrot.lane.b32.xlu0 %v1691_v63, %s2086_s0 }
0x14e5   :  { %v2054_v0 = vpop.eup %2053 }
0x14e6   :  { %v1520_v1 = vmul.f32 2.0, %v2054_v0  ;;  %v1522_v15 = vmul.f32 %v2054_v0, %v1383_v38 }
0x14e8   :  { %v1694_v3 = vadd.f32 -1.0, %v1520_v1 }
0x14ea   :  { %1524 = vrot.lane.b32.xlu1 %v1694_v3, %s2086_s0 }
0x1554   :  { %v1452_v37 = vpop.permute.xlu0 %1451 }
0x1555   :  { %v1454_v11 = vmul.f32 %v2052_v33, %v1452_v37 }
0x1557   :  { %1456 = vrot.lane.b32.xlu0 %v1454_v11, %s2087_s5 }
0x155c   :  { %v1525_v4 = vpop.permute.xlu1 %1524 }
0x155d   :  { %v1527_v5 = vmul.f32 %v2054_v0, %v1525_v4 }
0x155f   :  { %1529 = vrot.lane.b32.xlu1 %v1527_v5, %s2087_s5 }
0x15c9   :  { %v1457_v7 = vpop.permute.xlu0 %1456 }
0x15ca   :  { %v1459_v8 = vadd.f32 %v1457_v7, %v1449_v6 }
0x15cc   :  { %2055 = vtanh.f32 %v1459_v8 }
0x15d1   :  { %v1530_v18 = vpop.permute.xlu1 %1529 }
0x15d2   :  { %v1532_v9 = vadd.f32 %v1530_v18, %v1522_v15 }
0x15d4   :  { %2057 = vtanh.f32 %v1532_v9 }
0x15d6   :  { %v2056_v12 = vpop.eup %2055 }
0x15d7   :  { %1462 = vrot.lane.b32.xlu0 %v2056_v12, %s2086_s0 }
0x15de   :  { %v2058_v21 = vpop.eup %2057 }
0x15df   :  { %1535 = vrot.lane.b32.xlu1 %v2058_v21, %s2086_s0 }
0x1649   :  { %v1463_v13 = vpop.permute.xlu0 %1462 }
0x164a   :  { %v1465_v19 = vmul.f32 %v2052_v33, %v1463_v13 }
0x1651   :  { %v1536_v35 = vpop.permute.xlu1 %1535 }
0x1652   :  { %v1538_v22 = vmul.f32 %v2054_v0, %v1536_v35 }
0x1654   :  { %v1539_v23 = vpack.c.bf16 %v1538_v22, %v1465_v19 }
0x1656   :  { %1552 = vrot.lane.b32.xlu0 %v1539_v23, %s2087_s5 }
0x16c8   :  { %v1553_v25 = vpop.permute.xlu0 %1552 }
0x16c9   :  { %1929 = vmatmul.mubr.msk.bf16.vlgmr.msra.gmra.mrb[44].mxu1 %vm222_vm3, %v1553_v25 }
0x179c   :  { %v1603_v10 = vpop.f32.mrb[44].mxu1 }
0x179d   :  { %v1604_v39 = vadd.f32 %v1695_v26, %v1603_v10  ;;  %v1930_v17 = vpop.f32.mrb[45].mxu1 }
0x179e   :  { %v1606_v28 = vpop.f32.mrb[46].mxu1 }
0x179f   :  { %1610 = vst [vmem:[#allocation3] sm:$0xff] %v1604_v39  ;;  %v1607_v29 = vadd.f32 %v1695_v26, %v1606_v28  ;;  %v1931_v62 = vpop.f32.mrb[47].mxu1 }
0x17a1   :  { %1611 = vst [vmem:[#allocation3 + $0x8] sm:$0xff] %v1607_v29 }
0x17a2   :  { %2070 = shalt.err (!%p2067_p4)
}
0x17a3   :  { %s2071_s14 = scalar_lea.hbm %s2561_s8, 256 }
0x17a4   :  { %p2072_p5 = scmp.ne.s32.totalorder %s2561_s8, %s2071_s14  ;;  %p2075_p6 = scmp.lt.u32.totalorder %s2071_s14, %s2561_s8 }
0x17a6   :  { %p2077_p7 = pnand %p2075_p6, %p2072_p5 }
0x17a8   :  { %2080 = shalt.err (!%p2077_p7)
}
0x17a9   :  { %s2089_s17 = smov 128   ;;  %s2090_s18 = smov 8  }
0x17aa   :  { %1623 = dma.vmem_to_hbm [thread:$0]  %s1618_s11, 256, %s2561_s8, [#allocation4], %s2089_s17, %s2089_s17, %s2090_s18  }
0x17ab   :  { %2081 = dma.done.wait [#allocation4], 256  }
0x17ac   :  { %2082 = vsyncadd [#allocation4], 4294967040 }
0x17ad   :  { %1627 = vsyncpa [#allocation4], 1 }

</bundles_post_ra>
